<compile_context>
chip_gen: v6e
topology: v6e:2x2x1
jax: 0.10.0
libtpu: 0.0.40
codegen_flags: <defaults>
</compile_context>

<pallas_src>
import math

import jax
import jax.numpy as jnp
from jax.experimental import pallas as pl
from jax.experimental.pallas import tpu as pltpu

# ---------------- problem sizes (small, consistent with the module) -----------
B = 2          # batch
LQ = 8         # query sequence length
LKV = 8        # key/value sequence length
DIM = 32       # embedding dim
NUM_HEADS = 4
HEAD_DIM = DIM // NUM_HEADS
MLP_HIDDEN = int(DIM * 4.0)
SCALE = HEAD_DIM ** -0.5
LN_EPS = 1e-5

# rows of the packed vector slab (all f32, lanes 0:32 used unless noted)
_ROW_LN1_G, _ROW_LN1_B = 0, 1
_ROW_LN2Q_G, _ROW_LN2Q_B = 2, 3
_ROW_LN2KV_G, _ROW_LN2KV_B = 4, 5
_ROW_LN3_G, _ROW_LN3_B = 6, 7
_ROW_SA_BO, _ROW_CA_BO = 8, 9
_ROW_FC2_B = 10
_ROW_FC1_B = 11          # full 128 lanes
_N_VEC_ROWS = 12


# ---------------- in-kernel helpers --------------------------------------------
def _layernorm(x, g, b):
    mean = jnp.mean(x, axis=-1, keepdims=True)
    xc = x - mean
    var = jnp.mean(xc * xc, axis=-1, keepdims=True)
    return xc * jax.lax.rsqrt(var + LN_EPS) * g + b


def _attention_core(qp, kp, vp, wo_ref, bo):
    """Attention given packed (head-major) q / k / v projections.

    qp: (B*LQ, C) f32, kp/vp: (B*LKV, C) f32.  The softmax is done ONCE over all
    (batch, head) score blocks stacked along sublanes; the head merge is folded into a
    single (B*LQ, C) @ (C, C) output projection.
    """
    # --- per-(batch, head) tiny score matmuls (bf16 in, f32 acc) ---
    s_blocks = []
    for b in range(B):
        qb = qp[b * LQ:(b + 1) * LQ, :].astype(jnp.bfloat16)      # (LQ, C)
        kb = kp[b * LKV:(b + 1) * LKV, :].astype(jnp.bfloat16)    # (LKV, C)
        for h in range(NUM_HEADS):
            qh = qb[:, h * HEAD_DIM:(h + 1) * HEAD_DIM]
            kh = kb[:, h * HEAD_DIM:(h + 1) * HEAD_DIM]
            # qh @ kh^T without materializing a transpose (contract dim 1 with dim 1)
            s_blocks.append(jax.lax.dot_general(
                qh, kh, (((1,), (1,)), ((), ())),
                preferred_element_type=jnp.float32))              # (LQ, LKV)

    # --- one softmax for all heads & batches: (B*H*LQ, LKV) = (64, 8) ---
    s_all = jnp.concatenate(s_blocks, axis=0) * SCALE
    s_all = s_all - jnp.max(s_all, axis=-1, keepdims=True)
    p_all = jnp.exp(s_all)
    p_all = p_all * pl.reciprocal(jnp.sum(p_all, axis=-1, keepdims=True), approx=True)

    # --- per-(batch, head) pv, packed back into (B*LQ, C) head-major ---
    out_rows = []
    for b in range(B):
        vb = vp[b * LKV:(b + 1) * LKV, :].astype(jnp.bfloat16)    # (LKV, C)
        cols = []
        for h in range(NUM_HEADS):
            idx = b * NUM_HEADS + h
            ph = p_all[idx * LQ:(idx + 1) * LQ, :].astype(jnp.bfloat16)   # (LQ, LKV)
            vh = vb[:, h * HEAD_DIM:(h + 1) * HEAD_DIM]
            cols.append(jnp.dot(ph, vh, preferred_element_type=jnp.float32))
        out_rows.append(jnp.concatenate(cols, axis=1))            # (LQ, C)
    o = jnp.concatenate(out_rows, axis=0).astype(jnp.bfloat16)    # (B*LQ, C)

    # --- single fused output projection (head merge folded in) ---
    return jnp.dot(o, wo_ref[...], preferred_element_type=jnp.float32) + bo


# ---------------- fused CrossBlock kernel ---------------------------------------
def _cross_block_kernel(
    q_ref, kv_ref, vec_ref,
    sa_wqkv_ref, sa_wo_ref,
    ca_wq_ref, ca_wkv_ref, ca_wo_ref,
    fc1_w_ref, fc2_w_ref,
    o_ref,
):
    C = DIM

    def vrow(i, n=C):
        return vec_ref[i:i + 1, :n]        # (1, n) static slice of the vector slab

    x = q_ref[...]                          # (B*LQ, C) residual stream, f32
    kv = kv_ref[...]                        # (B*LKV, C)

    # --- q = q + self_attn(norm1(q)) ---
    xn = _layernorm(x, vrow(_ROW_LN1_G), vrow(_ROW_LN1_B))
    qkvp = jnp.dot(xn.astype(jnp.bfloat16), sa_wqkv_ref[...],
                   preferred_element_type=jnp.float32)            # (B*LQ, 3C)
    x = x + _attention_core(qkvp[:, :C], qkvp[:, C:2 * C], qkvp[:, 2 * C:],
                            sa_wo_ref, vrow(_ROW_SA_BO))

    # --- q = q + cross_attn(norm2q(q), norm2kv(kv)) ---
    xq = _layernorm(x, vrow(_ROW_LN2Q_G), vrow(_ROW_LN2Q_B))
    xkv = _layernorm(kv, vrow(_ROW_LN2KV_G), vrow(_ROW_LN2KV_B))
    qp = jnp.dot(xq.astype(jnp.bfloat16), ca_wq_ref[...],
                 preferred_element_type=jnp.float32)              # (B*LQ, C)
    kvp = jnp.dot(xkv.astype(jnp.bfloat16), ca_wkv_ref[...],
                  preferred_element_type=jnp.float32)             # (B*LKV, 2C)
    x = x + _attention_core(qp, kvp[:, :C], kvp[:, C:],
                            ca_wo_ref, vrow(_ROW_CA_BO))

    # --- q = q + mlp(norm3(q)) ---
    xn = _layernorm(x, vrow(_ROW_LN3_G), vrow(_ROW_LN3_B))
    h = jnp.dot(xn.astype(jnp.bfloat16), fc1_w_ref[...],
                preferred_element_type=jnp.float32) + vrow(_ROW_FC1_B, MLP_HIDDEN)
    h = 0.5 * h * (1.0 + jax.lax.erf(h * (1.0 / math.sqrt(2.0))))  # exact GELU (f32)
    x = x + jnp.dot(h.astype(jnp.bfloat16), fc2_w_ref[...],
                    preferred_element_type=jnp.float32) + vrow(_ROW_FC2_B)

    o_ref[...] = x


# ---------------- host-side weight preparation (done once) ----------------------
def prepare_params(p):
    """PyTorch [out, in] weights -> MXU-ready bf16 [in, out] slabs + one f32 vec slab."""
    def bf(w):
        return jnp.asarray(w).T.astype(jnp.bfloat16)   # transpose once on host

    vec = jnp.zeros((_N_VEC_ROWS, 128), jnp.float32)
    rows = [
        (_ROW_LN1_G, p["ln1_g"]), (_ROW_LN1_B, p["ln1_b"]),
        (_ROW_LN2Q_G, p["ln2q_g"]), (_ROW_LN2Q_B, p["ln2q_b"]),
        (_ROW_LN2KV_G, p["ln2kv_g"]), (_ROW_LN2KV_B, p["ln2kv_b"]),
        (_ROW_LN3_G, p["ln3_g"]), (_ROW_LN3_B, p["ln3_b"]),
        (_ROW_SA_BO, p["sa_bproj"]), (_ROW_CA_BO, p["ca_bproj"]),
        (_ROW_FC2_B, p["fc2_b"]), (_ROW_FC1_B, p["fc1_b"]),
    ]
    for i, r in rows:
        r = jnp.asarray(r, jnp.float32)
        vec = vec.at[i, :r.shape[0]].set(r)

    return {
        "vec": vec,                         # (12, 128) f32
        "sa_wqkv": bf(p["sa_wqkv"]),        # (C, 3C)  fused qkv
        "sa_wo": bf(p["sa_wproj"]),         # (C, C)
        "ca_wq": bf(p["ca_wq"]),            # (C, C)
        "ca_wkv": bf(p["ca_wkv"]),          # (C, 2C)  fused kv
        "ca_wo": bf(p["ca_wproj"]),         # (C, C)
        "fc1_w": bf(p["fc1_w"]),            # (C, HID)
        "fc2_w": bf(p["fc2_w"]),            # (HID, C)
    }


# ---------------- pallas_call wrapper (single fused call, no grid) ---------------
def cross_block_forward(q, kv, kp):
    Bb, Lq, C = q.shape
    Lkv = kv.shape[1]

    # fold batch into sublanes (host-side reshape is a bitcast of contiguous memory)
    q2 = q.reshape(Bb * Lq, C)
    kv2 = kv.reshape(Bb * Lkv, C)

    out = pl.pallas_call(
        _cross_block_kernel,
        out_shape=jax.ShapeDtypeStruct((Bb * Lq, C), jnp.float32),
        # no grid: single invocation, whole arrays resident in VMEM (<100 KiB total)
        input_output_aliases={0: 0},        # write back over q's (donated) buffer
    )(q2, kv2, kp["vec"], kp["sa_wqkv"], kp["sa_wo"],
      kp["ca_wq"], kp["ca_wkv"], kp["ca_wo"], kp["fc1_w"], kp["fc2_w"])

    return out.reshape(Bb, Lq, C)


# ---------------- pure-JAX reference for verification ---------------------------
def _ref_ln(x, g, b):
    mean = x.mean(-1, keepdims=True)
    var = ((x - mean) ** 2).mean(-1, keepdims=True)
    return (x - mean) / jnp.sqrt(var + LN_EPS) * g + b


def _ref_split_heads(x):                       # (B, L, C) -> (B, H, L, D)
    Bb, L, C = x.shape
    return x.reshape(Bb, L, NUM_HEADS, HEAD_DIM).transpose(0, 2, 1, 3)


def _ref_mha(q, k, v):                         # (B, H, L, D)
    s = jnp.einsum("bhqd,bhkd->bhqk", q, k) * SCALE
    p_ = jax.nn.softmax(s, axis=-1)
    o = jnp.einsum("bhqk,bhkd->bhqd", p_, v)
    Bb, H, L, D = o.shape
    return o.transpose(0, 2, 1, 3).reshape(Bb, L, H * D)


def cross_block_reference(q, kv, p):
    x = _ref_ln(q, p["ln1_g"], p["ln1_b"])
    qkv = x @ p["sa_wqkv"].T
    sq, sk, sv = qkv[..., :DIM], qkv[..., DIM:2 * DIM], qkv[..., 2 * DIM:]
    sa = _ref_mha(_ref_split_heads(sq), _ref_split_heads(sk), _ref_split_heads(sv))
    q = q + sa @ p["sa_wproj"].T + p["sa_bproj"]

    xq = _ref_ln(q, p["ln2q_g"], p["ln2q_b"])
    xkv = _ref_ln(kv, p["ln2kv_g"], p["ln2kv_b"])
    cq = xq @ p["ca_wq"].T
    ckv = xkv @ p["ca_wkv"].T
    ck, cv = ckv[..., :DIM], ckv[..., DIM:]
    ca = _ref_mha(_ref_split_heads(cq), _ref_split_heads(ck), _ref_split_heads(cv))
    q = q + ca @ p["ca_wproj"].T + p["ca_bproj"]

    x = _ref_ln(q, p["ln3_g"], p["ln3_b"])
    h = jax.nn.gelu(x @ p["fc1_w"].T + p["fc1_b"], approximate=False)
    q = q + h @ p["fc2_w"].T + p["fc2_b"]
    return q


# ---------------- deterministic parameter init -----------------------------------
def init_params(key):
    ks = jax.random.split(key, 8)
    std = 0.02
    p = {
        "ln1_g": jnp.ones((DIM,), jnp.float32), "ln1_b": jnp.zeros((DIM,), jnp.float32),
        "ln2q_g": jnp.ones((DIM,), jnp.float32), "ln2q_b": jnp.zeros((DIM,), jnp.float32),
        "ln2kv_g": jnp.ones((DIM,), jnp.float32), "ln2kv_b": jnp.zeros((DIM,), jnp.float32),
        "ln3_g": jnp.ones((DIM,), jnp.float32), "ln3_b": jnp.zeros((DIM,), jnp.float32),
        # self-attention (qkv_bias=False)
        "sa_wqkv": std * jax.random.normal(ks[0], (3 * DIM, DIM), jnp.float32),
        "sa_wproj": std * jax.random.normal(ks[1], (DIM, DIM), jnp.float32),
        "sa_bproj": jnp.zeros((DIM,), jnp.float32),
        # cross-attention (qkv_bias=False)
        "ca_wq": std * jax.random.normal(ks[2], (DIM, DIM), jnp.float32),
        "ca_wkv": std * jax.random.normal(ks[3], (2 * DIM, DIM), jnp.float32),
        "ca_wproj": std * jax.random.normal(ks[4], (DIM, DIM), jnp.float32),
        "ca_bproj": jnp.zeros((DIM,), jnp.float32),
        # MLP
        "fc1_w": std * jax.random.normal(ks[5], (MLP_HIDDEN, DIM), jnp.float32),
        "fc1_b": 0.01 * jnp.ones((MLP_HIDDEN,), jnp.float32),
        "fc2_w": std * jax.random.normal(ks[6], (DIM, MLP_HIDDEN), jnp.float32),
        "fc2_b": 0.01 * jnp.ones((DIM,), jnp.float32),
    }
    return p


# ---------------- main -----------------------------------------------------------
if __name__ == "__main__":
    key = jax.random.PRNGKey(0)
    kq, kkv, kp_key = jax.random.split(key, 3)
    q = jax.random.normal(kq, (B, LQ, DIM), jnp.float32)
    kv = jax.random.normal(kkv, (B, LKV, DIM), jnp.float32)
    params = init_params(kp_key)

    kernel_params = prepare_params(params)

    # Reference must be computed BEFORE the kernel call: q is donated at the jit
    # boundary (so input_output_aliases={0:0} aliases instead of copying).
    ref = cross_block_reference(q, kv, params)

    fwd = jax.jit(cross_block_forward, donate_argnums=0)
    out = jax.block_until_ready(fwd(q, kv, kernel_params))

    assert out.shape == (B, LQ, DIM)
    # Tolerance: matmuls use bf16 inputs with f32 accumulation and the softmax
    # denominator uses the EUP approximate reciprocal; end-to-end error at these scales
    # is a few e-4, well inside 2e-3.
    assert jnp.allclose(out, ref, atol=2e-3, rtol=1e-3), (
        f"max abs diff = {jnp.max(jnp.abs(out - ref))}"
    )
    print("KERNEL_OK")
</pallas_src>

<mosaic_0001>
module attributes {stable_mosaic.version = 11 : i64} {
  func.func @_cross_block_kernel(%arg0: memref<16x32xf32, #tpu.memory_space<vmem>>, %arg1: memref<16x32xf32, #tpu.memory_space<vmem>>, %arg2: memref<12x128xf32, #tpu.memory_space<vmem>>, %arg3: memref<32x96xbf16, #tpu.memory_space<vmem>>, %arg4: memref<32x32xbf16, #tpu.memory_space<vmem>>, %arg5: memref<32x32xbf16, #tpu.memory_space<vmem>>, %arg6: memref<32x64xbf16, #tpu.memory_space<vmem>>, %arg7: memref<32x32xbf16, #tpu.memory_space<vmem>>, %arg8: memref<32x128xbf16, #tpu.memory_space<vmem>>, %arg9: memref<128x32xbf16, #tpu.memory_space<vmem>>, %arg10: memref<16x32xf32, #tpu.memory_space<vmem>>) attributes {dimension_semantics = [], scalar_prefetch = 0 : i64, scratch_operands = 0 : i64, tpu.core_type = #tpu.core_type<tc>} {
    %c0 = arith.constant 0 : index
    %c0_0 = arith.constant 0 : index
    %0 = vector.load %arg0[%c0, %c0_0] : memref<16x32xf32, #tpu.memory_space<vmem>>, vector<16x32xf32>
    %c0_1 = arith.constant 0 : index
    %c0_2 = arith.constant 0 : index
    %1 = vector.load %arg1[%c0_1, %c0_2] : memref<16x32xf32, #tpu.memory_space<vmem>>, vector<16x32xf32>
    %c0_3 = arith.constant 0 : index
    %c0_4 = arith.constant 0 : index
    %2 = vector.load %arg2[%c0_3, %c0_4] : memref<12x128xf32, #tpu.memory_space<vmem>>, vector<1x32xf32>
    %c1 = arith.constant 1 : index
    %c0_5 = arith.constant 0 : index
    %3 = vector.load %arg2[%c1, %c0_5] : memref<12x128xf32, #tpu.memory_space<vmem>>, vector<1x32xf32>
    %cst = arith.constant dense<0.000000e+00> : vector<16xf32>
    %4 = vector.multi_reduction <add>, %0, %cst [1] : vector<16x32xf32> to vector<16xf32>
    %5 = vector.shape_cast %4 : vector<16xf32> to vector<16x1xf32>
    %cst_6 = arith.constant 3.200000e+01 : f32
    %6 = vector.broadcast %cst_6 : f32 to vector<16x1xf32>
    %7 = arith.divf %5, %6 : vector<16x1xf32>
    %8 = vector.broadcast %7 : vector<16x1xf32> to vector<16x32xf32>
    %9 = arith.subf %0, %8 : vector<16x32xf32>
    %10 = arith.mulf %9, %9 : vector<16x32xf32>
    %cst_7 = arith.constant dense<0.000000e+00> : vector<16xf32>
    %11 = vector.multi_reduction <add>, %10, %cst_7 [1] : vector<16x32xf32> to vector<16xf32>
    %12 = vector.shape_cast %11 : vector<16xf32> to vector<16x1xf32>
    %cst_8 = arith.constant 3.200000e+01 : f32
    %13 = vector.broadcast %cst_8 : f32 to vector<16x1xf32>
    %14 = arith.divf %12, %13 : vector<16x1xf32>
    %cst_9 = arith.constant 9.99999974E-6 : f32
    %15 = vector.broadcast %cst_9 : f32 to vector<16x1xf32>
    %16 = arith.addf %14, %15 : vector<16x1xf32>
    %17 = math.rsqrt %16 : vector<16x1xf32>
    %18 = vector.broadcast %17 : vector<16x1xf32> to vector<16x32xf32>
    %19 = arith.mulf %9, %18 : vector<16x32xf32>
    %20 = vector.broadcast %2 : vector<1x32xf32> to vector<16x32xf32>
    %21 = arith.mulf %19, %20 : vector<16x32xf32>
    %22 = vector.broadcast %3 : vector<1x32xf32> to vector<16x32xf32>
    %23 = arith.addf %21, %22 : vector<16x32xf32>
    %24 = arith.truncf %23 : vector<16x32xf32> to vector<16x32xbf16>
    %c0_10 = arith.constant 0 : index
    %c0_11 = arith.constant 0 : index
    %25 = vector.load %arg3[%c0_10, %c0_11] : memref<32x96xbf16, #tpu.memory_space<vmem>>, vector<32x96xbf16>
    %cst_12 = arith.constant dense<0.000000e+00> : vector<16x96xf32>
    %26 = tpu.matmul %24, %25, %cst_12 {dimension_numbers = #tpu.dot_dimension_numbers<[1], [0], [0], [1], [0, 0, 1, 1], [], []>} : vector<16x32xbf16>, vector<32x96xbf16>, vector<16x96xf32> -> vector<16x96xf32>
    %27 = vector.extract_strided_slice %26 {offsets = [0, 0], sizes = [16, 32], strides = [1, 1]} : vector<16x96xf32> to vector<16x32xf32>
    %28 = vector.extract_strided_slice %26 {offsets = [0, 32], sizes = [16, 32], strides = [1, 1]} : vector<16x96xf32> to vector<16x32xf32>
    %29 = vector.extract_strided_slice %26 {offsets = [0, 64], sizes = [16, 32], strides = [1, 1]} : vector<16x96xf32> to vector<16x32xf32>
    %c8 = arith.constant 8 : index
    %c0_13 = arith.constant 0 : index
    %30 = vector.load %arg2[%c8, %c0_13] : memref<12x128xf32, #tpu.memory_space<vmem>>, vector<1x32xf32>
    %31 = vector.extract_strided_slice %27 {offsets = [0, 0], sizes = [8, 32], strides = [1, 1]} : vector<16x32xf32> to vector<8x32xf32>
    %32 = arith.truncf %31 : vector<8x32xf32> to vector<8x32xbf16>
    %33 = vector.extract_strided_slice %28 {offsets = [0, 0], sizes = [8, 32], strides = [1, 1]} : vector<16x32xf32> to vector<8x32xf32>
    %34 = arith.truncf %33 : vector<8x32xf32> to vector<8x32xbf16>
    %35 = vector.extract_strided_slice %32 {offsets = [0, 0], sizes = [8, 8], strides = [1, 1]} : vector<8x32xbf16> to vector<8x8xbf16>
    %36 = vector.extract_strided_slice %34 {offsets = [0, 0], sizes = [8, 8], strides = [1, 1]} : vector<8x32xbf16> to vector<8x8xbf16>
    %cst_14 = arith.constant dense<0.000000e+00> : vector<8x8xf32>
    %37 = tpu.matmul %35, %36, %cst_14 {dimension_numbers = #tpu.dot_dimension_numbers<[1], [1], [0], [0], [0, 0, 1, 0], [], []>} : vector<8x8xbf16>, vector<8x8xbf16>, vector<8x8xf32> -> vector<8x8xf32>
    %38 = vector.extract_strided_slice %32 {offsets = [0, 8], sizes = [8, 8], strides = [1, 1]} : vector<8x32xbf16> to vector<8x8xbf16>
    %39 = vector.extract_strided_slice %34 {offsets = [0, 8], sizes = [8, 8], strides = [1, 1]} : vector<8x32xbf16> to vector<8x8xbf16>
    %cst_15 = arith.constant dense<0.000000e+00> : vector<8x8xf32>
    %40 = tpu.matmul %38, %39, %cst_15 {dimension_numbers = #tpu.dot_dimension_numbers<[1], [1], [0], [0], [0, 0, 1, 0], [], []>} : vector<8x8xbf16>, vector<8x8xbf16>, vector<8x8xf32> -> vector<8x8xf32>
    %41 = vector.extract_strided_slice %32 {offsets = [0, 16], sizes = [8, 8], strides = [1, 1]} : vector<8x32xbf16> to vector<8x8xbf16>
    %42 = vector.extract_strided_slice %34 {offsets = [0, 16], sizes = [8, 8], strides = [1, 1]} : vector<8x32xbf16> to vector<8x8xbf16>
    %cst_16 = arith.constant dense<0.000000e+00> : vector<8x8xf32>
    %43 = tpu.matmul %41, %42, %cst_16 {dimension_numbers = #tpu.dot_dimension_numbers<[1], [1], [0], [0], [0, 0, 1, 0], [], []>} : vector<8x8xbf16>, vector<8x8xbf16>, vector<8x8xf32> -> vector<8x8xf32>
    %44 = vector.extract_strided_slice %32 {offsets = [0, 24], sizes = [8, 8], strides = [1, 1]} : vector<8x32xbf16> to vector<8x8xbf16>
    %45 = vector.extract_strided_slice %34 {offsets = [0, 24], sizes = [8, 8], strides = [1, 1]} : vector<8x32xbf16> to vector<8x8xbf16>
    %cst_17 = arith.constant dense<0.000000e+00> : vector<8x8xf32>
    %46 = tpu.matmul %44, %45, %cst_17 {dimension_numbers = #tpu.dot_dimension_numbers<[1], [1], [0], [0], [0, 0, 1, 0], [], []>} : vector<8x8xbf16>, vector<8x8xbf16>, vector<8x8xf32> -> vector<8x8xf32>
    %47 = vector.extract_strided_slice %27 {offsets = [8, 0], sizes = [8, 32], strides = [1, 1]} : vector<16x32xf32> to vector<8x32xf32>
    %48 = arith.truncf %47 : vector<8x32xf32> to vector<8x32xbf16>
    %49 = vector.extract_strided_slice %28 {offsets = [8, 0], sizes = [8, 32], strides = [1, 1]} : vector<16x32xf32> to vector<8x32xf32>
    %50 = arith.truncf %49 : vector<8x32xf32> to vector<8x32xbf16>
    %51 = vector.extract_strided_slice %48 {offsets = [0, 0], sizes = [8, 8], strides = [1, 1]} : vector<8x32xbf16> to vector<8x8xbf16>
    %52 = vector.extract_strided_slice %50 {offsets = [0, 0], sizes = [8, 8], strides = [1, 1]} : vector<8x32xbf16> to vector<8x8xbf16>
    %cst_18 = arith.constant dense<0.000000e+00> : vector<8x8xf32>
    %53 = tpu.matmul %51, %52, %cst_18 {dimension_numbers = #tpu.dot_dimension_numbers<[1], [1], [0], [0], [0, 0, 1, 0], [], []>} : vector<8x8xbf16>, vector<8x8xbf16>, vector<8x8xf32> -> vector<8x8xf32>
    %54 = vector.extract_strided_slice %48 {offsets = [0, 8], sizes = [8, 8], strides = [1, 1]} : vector<8x32xbf16> to vector<8x8xbf16>
    %55 = vector.extract_strided_slice %50 {offsets = [0, 8], sizes = [8, 8], strides = [1, 1]} : vector<8x32xbf16> to vector<8x8xbf16>
    %cst_19 = arith.constant dense<0.000000e+00> : vector<8x8xf32>
    %56 = tpu.matmul %54, %55, %cst_19 {dimension_numbers = #tpu.dot_dimension_numbers<[1], [1], [0], [0], [0, 0, 1, 0], [], []>} : vector<8x8xbf16>, vector<8x8xbf16>, vector<8x8xf32> -> vector<8x8xf32>
    %57 = vector.extract_strided_slice %48 {offsets = [0, 16], sizes = [8, 8], strides = [1, 1]} : vector<8x32xbf16> to vector<8x8xbf16>
    %58 = vector.extract_strided_slice %50 {offsets = [0, 16], sizes = [8, 8], strides = [1, 1]} : vector<8x32xbf16> to vector<8x8xbf16>
    %cst_20 = arith.constant dense<0.000000e+00> : vector<8x8xf32>
    %59 = tpu.matmul %57, %58, %cst_20 {dimension_numbers = #tpu.dot_dimension_numbers<[1], [1], [0], [0], [0, 0, 1, 0], [], []>} : vector<8x8xbf16>, vector<8x8xbf16>, vector<8x8xf32> -> vector<8x8xf32>
    %60 = vector.extract_strided_slice %48 {offsets = [0, 24], sizes = [8, 8], strides = [1, 1]} : vector<8x32xbf16> to vector<8x8xbf16>
    %61 = vector.extract_strided_slice %50 {offsets = [0, 24], sizes = [8, 8], strides = [1, 1]} : vector<8x32xbf16> to vector<8x8xbf16>
    %cst_21 = arith.constant dense<0.000000e+00> : vector<8x8xf32>
    %62 = tpu.matmul %60, %61, %cst_21 {dimension_numbers = #tpu.dot_dimension_numbers<[1], [1], [0], [0], [0, 0, 1, 0], [], []>} : vector<8x8xbf16>, vector<8x8xbf16>, vector<8x8xf32> -> vector<8x8xf32>
    %63 = tpu.concatenate %37, %40, %43, %46, %53, %56, %59, %62 in 0 : vector<8x8xf32>, vector<8x8xf32>, vector<8x8xf32>, vector<8x8xf32>, vector<8x8xf32>, vector<8x8xf32>, vector<8x8xf32>, vector<8x8xf32> -> vector<64x8xf32>
    %cst_22 = arith.constant 0.353553385 : f32
    %64 = vector.broadcast %cst_22 : f32 to vector<64x8xf32>
    %65 = arith.mulf %63, %64 : vector<64x8xf32>
    %cst_23 = arith.constant dense<0xFF800000> : vector<64xf32>
    %66 = vector.multi_reduction <maximumf>, %65, %cst_23 [1] : vector<64x8xf32> to vector<64xf32>
    %67 = vector.shape_cast %66 : vector<64xf32> to vector<64x1xf32>
    %68 = vector.broadcast %67 : vector<64x1xf32> to vector<64x8xf32>
    %69 = arith.subf %65, %68 : vector<64x8xf32>
    %70 = math.exp %69 : vector<64x8xf32>
    %cst_24 = arith.constant dense<0.000000e+00> : vector<64xf32>
    %71 = vector.multi_reduction <add>, %70, %cst_24 [1] : vector<64x8xf32> to vector<64xf32>
    %72 = vector.shape_cast %71 : vector<64xf32> to vector<64x1xf32>
    %73 = tpu.reciprocal %72 {approx = true} : vector<64x1xf32> -> vector<64x1xf32>
    %74 = vector.broadcast %73 : vector<64x1xf32> to vector<64x8xf32>
    %75 = arith.mulf %70, %74 : vector<64x8xf32>
    %76 = vector.extract_strided_slice %29 {offsets = [0, 0], sizes = [8, 32], strides = [1, 1]} : vector<16x32xf32> to vector<8x32xf32>
    %77 = arith.truncf %76 : vector<8x32xf32> to vector<8x32xbf16>
    %78 = vector.extract_strided_slice %75 {offsets = [0, 0], sizes = [8, 8], strides = [1, 1]} : vector<64x8xf32> to vector<8x8xf32>
    %79 = arith.truncf %78 : vector<8x8xf32> to vector<8x8xbf16>
    %80 = vector.extract_strided_slice %77 {offsets = [0, 0], sizes = [8, 8], strides = [1, 1]} : vector<8x32xbf16> to vector<8x8xbf16>
    %cst_25 = arith.constant dense<0.000000e+00> : vector<8x8xf32>
    %81 = tpu.matmul %79, %80, %cst_25 {dimension_numbers = #tpu.dot_dimension_numbers<[1], [0], [0], [1], [0, 0, 1, 1], [], []>} : vector<8x8xbf16>, vector<8x8xbf16>, vector<8x8xf32> -> vector<8x8xf32>
    %82 = vector.extract_strided_slice %75 {offsets = [8, 0], sizes = [8, 8], strides = [1, 1]} : vector<64x8xf32> to vector<8x8xf32>
    %83 = arith.truncf %82 : vector<8x8xf32> to vector<8x8xbf16>
    %84 = vector.extract_strided_slice %77 {offsets = [0, 8], sizes = [8, 8], strides = [1, 1]} : vector<8x32xbf16> to vector<8x8xbf16>
    %cst_26 = arith.constant dense<0.000000e+00> : vector<8x8xf32>
    %85 = tpu.matmul %83, %84, %cst_26 {dimension_numbers = #tpu.dot_dimension_numbers<[1], [0], [0], [1], [0, 0, 1, 1], [], []>} : vector<8x8xbf16>, vector<8x8xbf16>, vector<8x8xf32> -> vector<8x8xf32>
    %86 = vector.extract_strided_slice %75 {offsets = [16, 0], sizes = [8, 8], strides = [1, 1]} : vector<64x8xf32> to vector<8x8xf32>
    %87 = arith.truncf %86 : vector<8x8xf32> to vector<8x8xbf16>
    %88 = vector.extract_strided_slice %77 {offsets = [0, 16], sizes = [8, 8], strides = [1, 1]} : vector<8x32xbf16> to vector<8x8xbf16>
    %cst_27 = arith.constant dense<0.000000e+00> : vector<8x8xf32>
    %89 = tpu.matmul %87, %88, %cst_27 {dimension_numbers = #tpu.dot_dimension_numbers<[1], [0], [0], [1], [0, 0, 1, 1], [], []>} : vector<8x8xbf16>, vector<8x8xbf16>, vector<8x8xf32> -> vector<8x8xf32>
    %90 = vector.extract_strided_slice %75 {offsets = [24, 0], sizes = [8, 8], strides = [1, 1]} : vector<64x8xf32> to vector<8x8xf32>
    %91 = arith.truncf %90 : vector<8x8xf32> to vector<8x8xbf16>
    %92 = vector.extract_strided_slice %77 {offsets = [0, 24], sizes = [8, 8], strides = [1, 1]} : vector<8x32xbf16> to vector<8x8xbf16>
    %cst_28 = arith.constant dense<0.000000e+00> : vector<8x8xf32>
    %93 = tpu.matmul %91, %92, %cst_28 {dimension_numbers = #tpu.dot_dimension_numbers<[1], [0], [0], [1], [0, 0, 1, 1], [], []>} : vector<8x8xbf16>, vector<8x8xbf16>, vector<8x8xf32> -> vector<8x8xf32>
    %94 = tpu.concatenate %81, %85, %89, %93 in 1 : vector<8x8xf32>, vector<8x8xf32>, vector<8x8xf32>, vector<8x8xf32> -> vector<8x32xf32>
    %95 = vector.extract_strided_slice %29 {offsets = [8, 0], sizes = [8, 32], strides = [1, 1]} : vector<16x32xf32> to vector<8x32xf32>
    %96 = arith.truncf %95 : vector<8x32xf32> to vector<8x32xbf16>
    %97 = vector.extract_strided_slice %75 {offsets = [32, 0], sizes = [8, 8], strides = [1, 1]} : vector<64x8xf32> to vector<8x8xf32>
    %98 = arith.truncf %97 : vector<8x8xf32> to vector<8x8xbf16>
    %99 = vector.extract_strided_slice %96 {offsets = [0, 0], sizes = [8, 8], strides = [1, 1]} : vector<8x32xbf16> to vector<8x8xbf16>
    %cst_29 = arith.constant dense<0.000000e+00> : vector<8x8xf32>
    %100 = tpu.matmul %98, %99, %cst_29 {dimension_numbers = #tpu.dot_dimension_numbers<[1], [0], [0], [1], [0, 0, 1, 1], [], []>} : vector<8x8xbf16>, vector<8x8xbf16>, vector<8x8xf32> -> vector<8x8xf32>
    %101 = vector.extract_strided_slice %75 {offsets = [40, 0], sizes = [8, 8], strides = [1, 1]} : vector<64x8xf32> to vector<8x8xf32>
    %102 = arith.truncf %101 : vector<8x8xf32> to vector<8x8xbf16>
    %103 = vector.extract_strided_slice %96 {offsets = [0, 8], sizes = [8, 8], strides = [1, 1]} : vector<8x32xbf16> to vector<8x8xbf16>
    %cst_30 = arith.constant dense<0.000000e+00> : vector<8x8xf32>
    %104 = tpu.matmul %102, %103, %cst_30 {dimension_numbers = #tpu.dot_dimension_numbers<[1], [0], [0], [1], [0, 0, 1, 1], [], []>} : vector<8x8xbf16>, vector<8x8xbf16>, vector<8x8xf32> -> vector<8x8xf32>
    %105 = vector.extract_strided_slice %75 {offsets = [48, 0], sizes = [8, 8], strides = [1, 1]} : vector<64x8xf32> to vector<8x8xf32>
    %106 = arith.truncf %105 : vector<8x8xf32> to vector<8x8xbf16>
    %107 = vector.extract_strided_slice %96 {offsets = [0, 16], sizes = [8, 8], strides = [1, 1]} : vector<8x32xbf16> to vector<8x8xbf16>
    %cst_31 = arith.constant dense<0.000000e+00> : vector<8x8xf32>
    %108 = tpu.matmul %106, %107, %cst_31 {dimension_numbers = #tpu.dot_dimension_numbers<[1], [0], [0], [1], [0, 0, 1, 1], [], []>} : vector<8x8xbf16>, vector<8x8xbf16>, vector<8x8xf32> -> vector<8x8xf32>
    %109 = vector.extract_strided_slice %75 {offsets = [56, 0], sizes = [8, 8], strides = [1, 1]} : vector<64x8xf32> to vector<8x8xf32>
    %110 = arith.truncf %109 : vector<8x8xf32> to vector<8x8xbf16>
    %111 = vector.extract_strided_slice %96 {offsets = [0, 24], sizes = [8, 8], strides = [1, 1]} : vector<8x32xbf16> to vector<8x8xbf16>
    %cst_32 = arith.constant dense<0.000000e+00> : vector<8x8xf32>
    %112 = tpu.matmul %110, %111, %cst_32 {dimension_numbers = #tpu.dot_dimension_numbers<[1], [0], [0], [1], [0, 0, 1, 1], [], []>} : vector<8x8xbf16>, vector<8x8xbf16>, vector<8x8xf32> -> vector<8x8xf32>
    %113 = tpu.concatenate %100, %104, %108, %112 in 1 : vector<8x8xf32>, vector<8x8xf32>, vector<8x8xf32>, vector<8x8xf32> -> vector<8x32xf32>
    %114 = tpu.concatenate %94, %113 in 0 : vector<8x32xf32>, vector<8x32xf32> -> vector<16x32xf32>
    %115 = arith.truncf %114 : vector<16x32xf32> to vector<16x32xbf16>
    %c0_33 = arith.constant 0 : index
    %c0_34 = arith.constant 0 : index
    %116 = vector.load %arg4[%c0_33, %c0_34] : memref<32x32xbf16, #tpu.memory_space<vmem>>, vector<32x32xbf16>
    %cst_35 = arith.constant dense<0.000000e+00> : vector<16x32xf32>
    %117 = tpu.matmul %115, %116, %cst_35 {dimension_numbers = #tpu.dot_dimension_numbers<[1], [0], [0], [1], [0, 0, 1, 1], [], []>} : vector<16x32xbf16>, vector<32x32xbf16>, vector<16x32xf32> -> vector<16x32xf32>
    %118 = vector.broadcast %30 : vector<1x32xf32> to vector<16x32xf32>
    %119 = arith.addf %117, %118 : vector<16x32xf32>
    %120 = arith.addf %0, %119 : vector<16x32xf32>
    %c2 = arith.constant 2 : index
    %c0_36 = arith.constant 0 : index
    %121 = vector.load %arg2[%c2, %c0_36] : memref<12x128xf32, #tpu.memory_space<vmem>>, vector<1x32xf32>
    %c3 = arith.constant 3 : index
    %c0_37 = arith.constant 0 : index
    %122 = vector.load %arg2[%c3, %c0_37] : memref<12x128xf32, #tpu.memory_space<vmem>>, vector<1x32xf32>
    %cst_38 = arith.constant dense<0.000000e+00> : vector<16xf32>
    %123 = vector.multi_reduction <add>, %120, %cst_38 [1] : vector<16x32xf32> to vector<16xf32>
    %124 = vector.shape_cast %123 : vector<16xf32> to vector<16x1xf32>
    %cst_39 = arith.constant 3.200000e+01 : f32
    %125 = vector.broadcast %cst_39 : f32 to vector<16x1xf32>
    %126 = arith.divf %124, %125 : vector<16x1xf32>
    %127 = vector.broadcast %126 : vector<16x1xf32> to vector<16x32xf32>
    %128 = arith.subf %120, %127 : vector<16x32xf32>
    %129 = arith.mulf %128, %128 : vector<16x32xf32>
    %cst_40 = arith.constant dense<0.000000e+00> : vector<16xf32>
    %130 = vector.multi_reduction <add>, %129, %cst_40 [1] : vector<16x32xf32> to vector<16xf32>
    %131 = vector.shape_cast %130 : vector<16xf32> to vector<16x1xf32>
    %cst_41 = arith.constant 3.200000e+01 : f32
    %132 = vector.broadcast %cst_41 : f32 to vector<16x1xf32>
    %133 = arith.divf %131, %132 : vector<16x1xf32>
    %cst_42 = arith.constant 9.99999974E-6 : f32
    %134 = vector.broadcast %cst_42 : f32 to vector<16x1xf32>
    %135 = arith.addf %133, %134 : vector<16x1xf32>
    %136 = math.rsqrt %135 : vector<16x1xf32>
    %137 = vector.broadcast %136 : vector<16x1xf32> to vector<16x32xf32>
    %138 = arith.mulf %128, %137 : vector<16x32xf32>
    %139 = vector.broadcast %121 : vector<1x32xf32> to vector<16x32xf32>
    %140 = arith.mulf %138, %139 : vector<16x32xf32>
    %141 = vector.broadcast %122 : vector<1x32xf32> to vector<16x32xf32>
    %142 = arith.addf %140, %141 : vector<16x32xf32>
    %c4 = arith.constant 4 : index
    %c0_43 = arith.constant 0 : index
    %143 = vector.load %arg2[%c4, %c0_43] : memref<12x128xf32, #tpu.memory_space<vmem>>, vector<1x32xf32>
    %c5 = arith.constant 5 : index
    %c0_44 = arith.constant 0 : index
    %144 = vector.load %arg2[%c5, %c0_44] : memref<12x128xf32, #tpu.memory_space<vmem>>, vector<1x32xf32>
    %cst_45 = arith.constant dense<0.000000e+00> : vector<16xf32>
    %145 = vector.multi_reduction <add>, %1, %cst_45 [1] : vector<16x32xf32> to vector<16xf32>
    %146 = vector.shape_cast %145 : vector<16xf32> to vector<16x1xf32>
    %cst_46 = arith.constant 3.200000e+01 : f32
    %147 = vector.broadcast %cst_46 : f32 to vector<16x1xf32>
    %148 = arith.divf %146, %147 : vector<16x1xf32>
    %149 = vector.broadcast %148 : vector<16x1xf32> to vector<16x32xf32>
    %150 = arith.subf %1, %149 : vector<16x32xf32>
    %151 = arith.mulf %150, %150 : vector<16x32xf32>
    %cst_47 = arith.constant dense<0.000000e+00> : vector<16xf32>
    %152 = vector.multi_reduction <add>, %151, %cst_47 [1] : vector<16x32xf32> to vector<16xf32>
    %153 = vector.shape_cast %152 : vector<16xf32> to vector<16x1xf32>
    %cst_48 = arith.constant 3.200000e+01 : f32
    %154 = vector.broadcast %cst_48 : f32 to vector<16x1xf32>
    %155 = arith.divf %153, %154 : vector<16x1xf32>
    %cst_49 = arith.constant 9.99999974E-6 : f32
    %156 = vector.broadcast %cst_49 : f32 to vector<16x1xf32>
    %157 = arith.addf %155, %156 : vector<16x1xf32>
    %158 = math.rsqrt %157 : vector<16x1xf32>
    %159 = vector.broadcast %158 : vector<16x1xf32> to vector<16x32xf32>
    %160 = arith.mulf %150, %159 : vector<16x32xf32>
    %161 = vector.broadcast %143 : vector<1x32xf32> to vector<16x32xf32>
    %162 = arith.mulf %160, %161 : vector<16x32xf32>
    %163 = vector.broadcast %144 : vector<1x32xf32> to vector<16x32xf32>
    %164 = arith.addf %162, %163 : vector<16x32xf32>
    %165 = arith.truncf %142 : vector<16x32xf32> to vector<16x32xbf16>
    %c0_50 = arith.constant 0 : index
    %c0_51 = arith.constant 0 : index
    %166 = vector.load %arg5[%c0_50, %c0_51] : memref<32x32xbf16, #tpu.memory_space<vmem>>, vector<32x32xbf16>
    %cst_52 = arith.constant dense<0.000000e+00> : vector<16x32xf32>
    %167 = tpu.matmul %165, %166, %cst_52 {dimension_numbers = #tpu.dot_dimension_numbers<[1], [0], [0], [1], [0, 0, 1, 1], [], []>} : vector<16x32xbf16>, vector<32x32xbf16>, vector<16x32xf32> -> vector<16x32xf32>
    %168 = arith.truncf %164 : vector<16x32xf32> to vector<16x32xbf16>
    %c0_53 = arith.constant 0 : index
    %c0_54 = arith.constant 0 : index
    %169 = vector.load %arg6[%c0_53, %c0_54] : memref<32x64xbf16, #tpu.memory_space<vmem>>, vector<32x64xbf16>
    %cst_55 = arith.constant dense<0.000000e+00> : vector<16x64xf32>
    %170 = tpu.matmul %168, %169, %cst_55 {dimension_numbers = #tpu.dot_dimension_numbers<[1], [0], [0], [1], [0, 0, 1, 1], [], []>} : vector<16x32xbf16>, vector<32x64xbf16>, vector<16x64xf32> -> vector<16x64xf32>
    %171 = vector.extract_strided_slice %170 {offsets = [0, 0], sizes = [16, 32], strides = [1, 1]} : vector<16x64xf32> to vector<16x32xf32>
    %172 = vector.extract_strided_slice %170 {offsets = [0, 32], sizes = [16, 32], strides = [1, 1]} : vector<16x64xf32> to vector<16x32xf32>
    %c9 = arith.constant 9 : index
    %c0_56 = arith.constant 0 : index
    %173 = vector.load %arg2[%c9, %c0_56] : memref<12x128xf32, #tpu.memory_space<vmem>>, vector<1x32xf32>
    %174 = vector.extract_strided_slice %167 {offsets = [0, 0], sizes = [8, 32], strides = [1, 1]} : vector<16x32xf32> to vector<8x32xf32>
    %175 = arith.truncf %174 : vector<8x32xf32> to vector<8x32xbf16>
    %176 = vector.extract_strided_slice %171 {offsets = [0, 0], sizes = [8, 32], strides = [1, 1]} : vector<16x32xf32> to vector<8x32xf32>
    %177 = arith.truncf %176 : vector<8x32xf32> to vector<8x32xbf16>
    %178 = vector.extract_strided_slice %175 {offsets = [0, 0], sizes = [8, 8], strides = [1, 1]} : vector<8x32xbf16> to vector<8x8xbf16>
    %179 = vector.extract_strided_slice %177 {offsets = [0, 0], sizes = [8, 8], strides = [1, 1]} : vector<8x32xbf16> to vector<8x8xbf16>
    %cst_57 = arith.constant dense<0.000000e+00> : vector<8x8xf32>
    %180 = tpu.matmul %178, %179, %cst_57 {dimension_numbers = #tpu.dot_dimension_numbers<[1], [1], [0], [0], [0, 0, 1, 0], [], []>} : vector<8x8xbf16>, vector<8x8xbf16>, vector<8x8xf32> -> vector<8x8xf32>
    %181 = vector.extract_strided_slice %175 {offsets = [0, 8], sizes = [8, 8], strides = [1, 1]} : vector<8x32xbf16> to vector<8x8xbf16>
    %182 = vector.extract_strided_slice %177 {offsets = [0, 8], sizes = [8, 8], strides = [1, 1]} : vector<8x32xbf16> to vector<8x8xbf16>
    %cst_58 = arith.constant dense<0.000000e+00> : vector<8x8xf32>
    %183 = tpu.matmul %181, %182, %cst_58 {dimension_numbers = #tpu.dot_dimension_numbers<[1], [1], [0], [0], [0, 0, 1, 0], [], []>} : vector<8x8xbf16>, vector<8x8xbf16>, vector<8x8xf32> -> vector<8x8xf32>
    %184 = vector.extract_strided_slice %175 {offsets = [0, 16], sizes = [8, 8], strides = [1, 1]} : vector<8x32xbf16> to vector<8x8xbf16>
    %185 = vector.extract_strided_slice %177 {offsets = [0, 16], sizes = [8, 8], strides = [1, 1]} : vector<8x32xbf16> to vector<8x8xbf16>
    %cst_59 = arith.constant dense<0.000000e+00> : vector<8x8xf32>
    %186 = tpu.matmul %184, %185, %cst_59 {dimension_numbers = #tpu.dot_dimension_numbers<[1], [1], [0], [0], [0, 0, 1, 0], [], []>} : vector<8x8xbf16>, vector<8x8xbf16>, vector<8x8xf32> -> vector<8x8xf32>
    %187 = vector.extract_strided_slice %175 {offsets = [0, 24], sizes = [8, 8], strides = [1, 1]} : vector<8x32xbf16> to vector<8x8xbf16>
    %188 = vector.extract_strided_slice %177 {offsets = [0, 24], sizes = [8, 8], strides = [1, 1]} : vector<8x32xbf16> to vector<8x8xbf16>
    %cst_60 = arith.constant dense<0.000000e+00> : vector<8x8xf32>
    %189 = tpu.matmul %187, %188, %cst_60 {dimension_numbers = #tpu.dot_dimension_numbers<[1], [1], [0], [0], [0, 0, 1, 0], [], []>} : vector<8x8xbf16>, vector<8x8xbf16>, vector<8x8xf32> -> vector<8x8xf32>
    %190 = vector.extract_strided_slice %167 {offsets = [8, 0], sizes = [8, 32], strides = [1, 1]} : vector<16x32xf32> to vector<8x32xf32>
    %191 = arith.truncf %190 : vector<8x32xf32> to vector<8x32xbf16>
    %192 = vector.extract_strided_slice %171 {offsets = [8, 0], sizes = [8, 32], strides = [1, 1]} : vector<16x32xf32> to vector<8x32xf32>
    %193 = arith.truncf %192 : vector<8x32xf32> to vector<8x32xbf16>
    %194 = vector.extract_strided_slice %191 {offsets = [0, 0], sizes = [8, 8], strides = [1, 1]} : vector<8x32xbf16> to vector<8x8xbf16>
    %195 = vector.extract_strided_slice %193 {offsets = [0, 0], sizes = [8, 8], strides = [1, 1]} : vector<8x32xbf16> to vector<8x8xbf16>
    %cst_61 = arith.constant dense<0.000000e+00> : vector<8x8xf32>
    %196 = tpu.matmul %194, %195, %cst_61 {dimension_numbers = #tpu.dot_dimension_numbers<[1], [1], [0], [0], [0, 0, 1, 0], [], []>} : vector<8x8xbf16>, vector<8x8xbf16>, vector<8x8xf32> -> vector<8x8xf32>
    %197 = vector.extract_strided_slice %191 {offsets = [0, 8], sizes = [8, 8], strides = [1, 1]} : vector<8x32xbf16> to vector<8x8xbf16>
    %198 = vector.extract_strided_slice %193 {offsets = [0, 8], sizes = [8, 8], strides = [1, 1]} : vector<8x32xbf16> to vector<8x8xbf16>
    %cst_62 = arith.constant dense<0.000000e+00> : vector<8x8xf32>
    %199 = tpu.matmul %197, %198, %cst_62 {dimension_numbers = #tpu.dot_dimension_numbers<[1], [1], [0], [0], [0, 0, 1, 0], [], []>} : vector<8x8xbf16>, vector<8x8xbf16>, vector<8x8xf32> -> vector<8x8xf32>
    %200 = vector.extract_strided_slice %191 {offsets = [0, 16], sizes = [8, 8], strides = [1, 1]} : vector<8x32xbf16> to vector<8x8xbf16>
    %201 = vector.extract_strided_slice %193 {offsets = [0, 16], sizes = [8, 8], strides = [1, 1]} : vector<8x32xbf16> to vector<8x8xbf16>
    %cst_63 = arith.constant dense<0.000000e+00> : vector<8x8xf32>
    %202 = tpu.matmul %200, %201, %cst_63 {dimension_numbers = #tpu.dot_dimension_numbers<[1], [1], [0], [0], [0, 0, 1, 0], [], []>} : vector<8x8xbf16>, vector<8x8xbf16>, vector<8x8xf32> -> vector<8x8xf32>
    %203 = vector.extract_strided_slice %191 {offsets = [0, 24], sizes = [8, 8], strides = [1, 1]} : vector<8x32xbf16> to vector<8x8xbf16>
    %204 = vector.extract_strided_slice %193 {offsets = [0, 24], sizes = [8, 8], strides = [1, 1]} : vector<8x32xbf16> to vector<8x8xbf16>
    %cst_64 = arith.constant dense<0.000000e+00> : vector<8x8xf32>
    %205 = tpu.matmul %203, %204, %cst_64 {dimension_numbers = #tpu.dot_dimension_numbers<[1], [1], [0], [0], [0, 0, 1, 0], [], []>} : vector<8x8xbf16>, vector<8x8xbf16>, vector<8x8xf32> -> vector<8x8xf32>
    %206 = tpu.concatenate %180, %183, %186, %189, %196, %199, %202, %205 in 0 : vector<8x8xf32>, vector<8x8xf32>, vector<8x8xf32>, vector<8x8xf32>, vector<8x8xf32>, vector<8x8xf32>, vector<8x8xf32>, vector<8x8xf32> -> vector<64x8xf32>
    %cst_65 = arith.constant 0.353553385 : f32
    %207 = vector.broadcast %cst_65 : f32 to vector<64x8xf32>
    %208 = arith.mulf %206, %207 : vector<64x8xf32>
    %cst_66 = arith.constant dense<0xFF800000> : vector<64xf32>
    %209 = vector.multi_reduction <maximumf>, %208, %cst_66 [1] : vector<64x8xf32> to vector<64xf32>
    %210 = vector.shape_cast %209 : vector<64xf32> to vector<64x1xf32>
    %211 = vector.broadcast %210 : vector<64x1xf32> to vector<64x8xf32>
    %212 = arith.subf %208, %211 : vector<64x8xf32>
    %213 = math.exp %212 : vector<64x8xf32>
    %cst_67 = arith.constant dense<0.000000e+00> : vector<64xf32>
    %214 = vector.multi_reduction <add>, %213, %cst_67 [1] : vector<64x8xf32> to vector<64xf32>
    %215 = vector.shape_cast %214 : vector<64xf32> to vector<64x1xf32>
    %216 = tpu.reciprocal %215 {approx = true} : vector<64x1xf32> -> vector<64x1xf32>
    %217 = vector.broadcast %216 : vector<64x1xf32> to vector<64x8xf32>
    %218 = arith.mulf %213, %217 : vector<64x8xf32>
    %219 = vector.extract_strided_slice %172 {offsets = [0, 0], sizes = [8, 32], strides = [1, 1]} : vector<16x32xf32> to vector<8x32xf32>
    %220 = arith.truncf %219 : vector<8x32xf32> to vector<8x32xbf16>
    %221 = vector.extract_strided_slice %218 {offsets = [0, 0], sizes = [8, 8], strides = [1, 1]} : vector<64x8xf32> to vector<8x8xf32>
    %222 = arith.truncf %221 : vector<8x8xf32> to vector<8x8xbf16>
    %223 = vector.extract_strided_slice %220 {offsets = [0, 0], sizes = [8, 8], strides = [1, 1]} : vector<8x32xbf16> to vector<8x8xbf16>
    %cst_68 = arith.constant dense<0.000000e+00> : vector<8x8xf32>
    %224 = tpu.matmul %222, %223, %cst_68 {dimension_numbers = #tpu.dot_dimension_numbers<[1], [0], [0], [1], [0, 0, 1, 1], [], []>} : vector<8x8xbf16>, vector<8x8xbf16>, vector<8x8xf32> -> vector<8x8xf32>
    %225 = vector.extract_strided_slice %218 {offsets = [8, 0], sizes = [8, 8], strides = [1, 1]} : vector<64x8xf32> to vector<8x8xf32>
    %226 = arith.truncf %225 : vector<8x8xf32> to vector<8x8xbf16>
    %227 = vector.extract_strided_slice %220 {offsets = [0, 8], sizes = [8, 8], strides = [1, 1]} : vector<8x32xbf16> to vector<8x8xbf16>
    %cst_69 = arith.constant dense<0.000000e+00> : vector<8x8xf32>
    %228 = tpu.matmul %226, %227, %cst_69 {dimension_numbers = #tpu.dot_dimension_numbers<[1], [0], [0], [1], [0, 0, 1, 1], [], []>} : vector<8x8xbf16>, vector<8x8xbf16>, vector<8x8xf32> -> vector<8x8xf32>
    %229 = vector.extract_strided_slice %218 {offsets = [16, 0], sizes = [8, 8], strides = [1, 1]} : vector<64x8xf32> to vector<8x8xf32>
    %230 = arith.truncf %229 : vector<8x8xf32> to vector<8x8xbf16>
    %231 = vector.extract_strided_slice %220 {offsets = [0, 16], sizes = [8, 8], strides = [1, 1]} : vector<8x32xbf16> to vector<8x8xbf16>
    %cst_70 = arith.constant dense<0.000000e+00> : vector<8x8xf32>
    %232 = tpu.matmul %230, %231, %cst_70 {dimension_numbers = #tpu.dot_dimension_numbers<[1], [0], [0], [1], [0, 0, 1, 1], [], []>} : vector<8x8xbf16>, vector<8x8xbf16>, vector<8x8xf32> -> vector<8x8xf32>
    %233 = vector.extract_strided_slice %218 {offsets = [24, 0], sizes = [8, 8], strides = [1, 1]} : vector<64x8xf32> to vector<8x8xf32>
    %234 = arith.truncf %233 : vector<8x8xf32> to vector<8x8xbf16>
    %235 = vector.extract_strided_slice %220 {offsets = [0, 24], sizes = [8, 8], strides = [1, 1]} : vector<8x32xbf16> to vector<8x8xbf16>
    %cst_71 = arith.constant dense<0.000000e+00> : vector<8x8xf32>
    %236 = tpu.matmul %234, %235, %cst_71 {dimension_numbers = #tpu.dot_dimension_numbers<[1], [0], [0], [1], [0, 0, 1, 1], [], []>} : vector<8x8xbf16>, vector<8x8xbf16>, vector<8x8xf32> -> vector<8x8xf32>
    %237 = tpu.concatenate %224, %228, %232, %236 in 1 : vector<8x8xf32>, vector<8x8xf32>, vector<8x8xf32>, vector<8x8xf32> -> vector<8x32xf32>
    %238 = vector.extract_strided_slice %172 {offsets = [8, 0], sizes = [8, 32], strides = [1, 1]} : vector<16x32xf32> to vector<8x32xf32>
    %239 = arith.truncf %238 : vector<8x32xf32> to vector<8x32xbf16>
    %240 = vector.extract_strided_slice %218 {offsets = [32, 0], sizes = [8, 8], strides = [1, 1]} : vector<64x8xf32> to vector<8x8xf32>
    %241 = arith.truncf %240 : vector<8x8xf32> to vector<8x8xbf16>
    %242 = vector.extract_strided_slice %239 {offsets = [0, 0], sizes = [8, 8], strides = [1, 1]} : vector<8x32xbf16> to vector<8x8xbf16>
    %cst_72 = arith.constant dense<0.000000e+00> : vector<8x8xf32>
    %243 = tpu.matmul %241, %242, %cst_72 {dimension_numbers = #tpu.dot_dimension_numbers<[1], [0], [0], [1], [0, 0, 1, 1], [], []>} : vector<8x8xbf16>, vector<8x8xbf16>, vector<8x8xf32> -> vector<8x8xf32>
    %244 = vector.extract_strided_slice %218 {offsets = [40, 0], sizes = [8, 8], strides = [1, 1]} : vector<64x8xf32> to vector<8x8xf32>
    %245 = arith.truncf %244 : vector<8x8xf32> to vector<8x8xbf16>
    %246 = vector.extract_strided_slice %239 {offsets = [0, 8], sizes = [8, 8], strides = [1, 1]} : vector<8x32xbf16> to vector<8x8xbf16>
    %cst_73 = arith.constant dense<0.000000e+00> : vector<8x8xf32>
    %247 = tpu.matmul %245, %246, %cst_73 {dimension_numbers = #tpu.dot_dimension_numbers<[1], [0], [0], [1], [0, 0, 1, 1], [], []>} : vector<8x8xbf16>, vector<8x8xbf16>, vector<8x8xf32> -> vector<8x8xf32>
    %248 = vector.extract_strided_slice %218 {offsets = [48, 0], sizes = [8, 8], strides = [1, 1]} : vector<64x8xf32> to vector<8x8xf32>
    %249 = arith.truncf %248 : vector<8x8xf32> to vector<8x8xbf16>
    %250 = vector.extract_strided_slice %239 {offsets = [0, 16], sizes = [8, 8], strides = [1, 1]} : vector<8x32xbf16> to vector<8x8xbf16>
    %cst_74 = arith.constant dense<0.000000e+00> : vector<8x8xf32>
    %251 = tpu.matmul %249, %250, %cst_74 {dimension_numbers = #tpu.dot_dimension_numbers<[1], [0], [0], [1], [0, 0, 1, 1], [], []>} : vector<8x8xbf16>, vector<8x8xbf16>, vector<8x8xf32> -> vector<8x8xf32>
    %252 = vector.extract_strided_slice %218 {offsets = [56, 0], sizes = [8, 8], strides = [1, 1]} : vector<64x8xf32> to vector<8x8xf32>
    %253 = arith.truncf %252 : vector<8x8xf32> to vector<8x8xbf16>
    %254 = vector.extract_strided_slice %239 {offsets = [0, 24], sizes = [8, 8], strides = [1, 1]} : vector<8x32xbf16> to vector<8x8xbf16>
    %cst_75 = arith.constant dense<0.000000e+00> : vector<8x8xf32>
    %255 = tpu.matmul %253, %254, %cst_75 {dimension_numbers = #tpu.dot_dimension_numbers<[1], [0], [0], [1], [0, 0, 1, 1], [], []>} : vector<8x8xbf16>, vector<8x8xbf16>, vector<8x8xf32> -> vector<8x8xf32>
    %256 = tpu.concatenate %243, %247, %251, %255 in 1 : vector<8x8xf32>, vector<8x8xf32>, vector<8x8xf32>, vector<8x8xf32> -> vector<8x32xf32>
    %257 = tpu.concatenate %237, %256 in 0 : vector<8x32xf32>, vector<8x32xf32> -> vector<16x32xf32>
    %258 = arith.truncf %257 : vector<16x32xf32> to vector<16x32xbf16>
    %c0_76 = arith.constant 0 : index
    %c0_77 = arith.constant 0 : index
    %259 = vector.load %arg7[%c0_76, %c0_77] : memref<32x32xbf16, #tpu.memory_space<vmem>>, vector<32x32xbf16>
    %cst_78 = arith.constant dense<0.000000e+00> : vector<16x32xf32>
    %260 = tpu.matmul %258, %259, %cst_78 {dimension_numbers = #tpu.dot_dimension_numbers<[1], [0], [0], [1], [0, 0, 1, 1], [], []>} : vector<16x32xbf16>, vector<32x32xbf16>, vector<16x32xf32> -> vector<16x32xf32>
    %261 = vector.broadcast %173 : vector<1x32xf32> to vector<16x32xf32>
    %262 = arith.addf %260, %261 : vector<16x32xf32>
    %263 = arith.addf %120, %262 : vector<16x32xf32>
    %c6 = arith.constant 6 : index
    %c0_79 = arith.constant 0 : index
    %264 = vector.load %arg2[%c6, %c0_79] : memref<12x128xf32, #tpu.memory_space<vmem>>, vector<1x32xf32>
    %c7 = arith.constant 7 : index
    %c0_80 = arith.constant 0 : index
    %265 = vector.load %arg2[%c7, %c0_80] : memref<12x128xf32, #tpu.memory_space<vmem>>, vector<1x32xf32>
    %cst_81 = arith.constant dense<0.000000e+00> : vector<16xf32>
    %266 = vector.multi_reduction <add>, %263, %cst_81 [1] : vector<16x32xf32> to vector<16xf32>
    %267 = vector.shape_cast %266 : vector<16xf32> to vector<16x1xf32>
    %cst_82 = arith.constant 3.200000e+01 : f32
    %268 = vector.broadcast %cst_82 : f32 to vector<16x1xf32>
    %269 = arith.divf %267, %268 : vector<16x1xf32>
    %270 = vector.broadcast %269 : vector<16x1xf32> to vector<16x32xf32>
    %271 = arith.subf %263, %270 : vector<16x32xf32>
    %272 = arith.mulf %271, %271 : vector<16x32xf32>
    %cst_83 = arith.constant dense<0.000000e+00> : vector<16xf32>
    %273 = vector.multi_reduction <add>, %272, %cst_83 [1] : vector<16x32xf32> to vector<16xf32>
    %274 = vector.shape_cast %273 : vector<16xf32> to vector<16x1xf32>
    %cst_84 = arith.constant 3.200000e+01 : f32
    %275 = vector.broadcast %cst_84 : f32 to vector<16x1xf32>
    %276 = arith.divf %274, %275 : vector<16x1xf32>
    %cst_85 = arith.constant 9.99999974E-6 : f32
    %277 = vector.broadcast %cst_85 : f32 to vector<16x1xf32>
    %278 = arith.addf %276, %277 : vector<16x1xf32>
    %279 = math.rsqrt %278 : vector<16x1xf32>
    %280 = vector.broadcast %279 : vector<16x1xf32> to vector<16x32xf32>
    %281 = arith.mulf %271, %280 : vector<16x32xf32>
    %282 = vector.broadcast %264 : vector<1x32xf32> to vector<16x32xf32>
    %283 = arith.mulf %281, %282 : vector<16x32xf32>
    %284 = vector.broadcast %265 : vector<1x32xf32> to vector<16x32xf32>
    %285 = arith.addf %283, %284 : vector<16x32xf32>
    %286 = arith.truncf %285 : vector<16x32xf32> to vector<16x32xbf16>
    %c0_86 = arith.constant 0 : index
    %c0_87 = arith.constant 0 : index
    %287 = vector.load %arg8[%c0_86, %c0_87] : memref<32x128xbf16, #tpu.memory_space<vmem>>, vector<32x128xbf16>
    %cst_88 = arith.constant dense<0.000000e+00> : vector<16x128xf32>
    %288 = tpu.matmul %286, %287, %cst_88 {dimension_numbers = #tpu.dot_dimension_numbers<[1], [0], [0], [1], [0, 0, 1, 1], [], []>} : vector<16x32xbf16>, vector<32x128xbf16>, vector<16x128xf32> -> vector<16x128xf32>
    %c11 = arith.constant 11 : index
    %c0_89 = arith.constant 0 : index
    %289 = vector.load %arg2[%c11, %c0_89] : memref<12x128xf32, #tpu.memory_space<vmem>>, vector<1x128xf32>
    %290 = vector.broadcast %289 : vector<1x128xf32> to vector<16x128xf32>
    %291 = arith.addf %288, %290 : vector<16x128xf32>
    %cst_90 = arith.constant 5.000000e-01 : f32
    %292 = vector.broadcast %cst_90 : f32 to vector<16x128xf32>
    %293 = arith.mulf %292, %291 : vector<16x128xf32>
    %cst_91 = arith.constant 0.707106769 : f32
    %294 = vector.broadcast %cst_91 : f32 to vector<16x128xf32>
    %295 = arith.mulf %291, %294 : vector<16x128xf32>
    %296 = math.erf %295 : vector<16x128xf32>
    %cst_92 = arith.constant 1.000000e+00 : f32
    %297 = vector.broadcast %cst_92 : f32 to vector<16x128xf32>
    %298 = arith.addf %297, %296 : vector<16x128xf32>
    %299 = arith.mulf %293, %298 : vector<16x128xf32>
    %300 = arith.truncf %299 : vector<16x128xf32> to vector<16x128xbf16>
    %c0_93 = arith.constant 0 : index
    %c0_94 = arith.constant 0 : index
    %301 = vector.load %arg9[%c0_93, %c0_94] : memref<128x32xbf16, #tpu.memory_space<vmem>>, vector<128x32xbf16>
    %cst_95 = arith.constant dense<0.000000e+00> : vector<16x32xf32>
    %302 = tpu.matmul %300, %301, %cst_95 {dimension_numbers = #tpu.dot_dimension_numbers<[1], [0], [0], [1], [0, 0, 1, 1], [], []>} : vector<16x128xbf16>, vector<128x32xbf16>, vector<16x32xf32> -> vector<16x32xf32>
    %303 = arith.addf %263, %302 : vector<16x32xf32>
    %c10 = arith.constant 10 : index
    %c0_96 = arith.constant 0 : index
    %304 = vector.load %arg2[%c10, %c0_96] : memref<12x128xf32, #tpu.memory_space<vmem>>, vector<1x32xf32>
    %305 = vector.broadcast %304 : vector<1x32xf32> to vector<16x32xf32>
    %306 = arith.addf %303, %305 : vector<16x32xf32>
    %c0_97 = arith.constant 0 : index
    %c0_98 = arith.constant 0 : index
    %307 = vector.load %arg10[%c0_97, %c0_98] : memref<16x32xf32, #tpu.memory_space<vmem>>, vector<16x32xf32>
    tpu.vector_store %arg10[%c0_97, %c0_98], %306 {strides = array<i32>} : memref<16x32xf32, #tpu.memory_space<vmem>>, vector<16x32xf32>,
    return
  }
}

</mosaic_0001>

<bundles_post_ra>
// kernel: cross_block_forward.1
= control target key start
LH: loop header
LB: loop body
LE: loop exit
PB: predicated region body
PF: predicated region fallthrough
CT: control target
= control target key end

     0   :  { %15 = vsyncpa [#allocation3], 0  ;;  %s3971_s0 = inlined_call_operand.hbm [shape: f32[16,32], index: 0, kind: input, shape index: {}, may-alias: {0,10}]   ;;  %s3972_s1 = inlined_call_operand.vmem [shape: f32[16,32], index: 1, kind: input, shape index: {}]   ;;  %s3973_s2 = inlined_call_operand.vmem [shape: f32[12,128], index: 2, kind: input, shape index: {}]   ;;  %s3974_s3 = inlined_call_operand.vmem [shape: bf16[32,96], index: 3, kind: input, shape index: {}]   ;;  %s3975_s4 = inlined_call_operand.vmem [shape: bf16[32,32], index: 4, kind: input, shape index: {}]   ;;  %s3976_s5 = inlined_call_operand.vmem [shape: bf16[32,32], index: 5, kind: input, shape index: {}]   ;;  %s3977_s6 = inlined_call_operand.hbm [shape: bf16[32,64], index: 6, kind: input, shape index: {}]   ;;  %s3978_s7 = inlined_call_operand.hbm [shape: bf16[32,32], index: 7, kind: input, shape index: {}]   ;;  %s3979_s8 = inlined_call_operand.hbm [shape: bf16[32,128], index: 8, kind: input, shape index: {}]   ;;  %s3980_s9 = inlined_call_operand.vmem [shape: bf16[128,32], index: 9, kind: input, shape index: {}]   ;;  %s3981_s10 = inlined_call_operand.hbm [shape: f32[16,32], index: 10, kind: output, shape index: {}, may-alias: {0,10}]  }
   0x1   :  { %16 = vsyncpa [#allocation6], 0 }
   0x2   :  { %17 = vsyncpa [#allocation9], 0 }
   0x3   :  { %18 = vsyncpa [#allocation4], 0  ;;  %s3315_s13 = smov [#allocation5]  }
   0x4   :  { %s46_s14 = sshll.u32 %s3315_s13, 4  ;;  %s47_s14 = int_to_ptr.vmem [resolvable:$true] %s46_s14 }
   0x5   :  { %s3215_s15 = scalar_lea.vmem %s47_s14, 256  ;;  %p3220_p1 = scmp.lt.s32.totalorder %s47_s14, %s47_s14 }
   0x6   :  { %p3216_p0 = scmp.ne.s32.totalorder %s47_s14, %s3215_s15  ;;  %p3221_p2 = scmp.lt.s32.totalorder %s3215_s15, %s3215_s15 }
   0x8   :  { %p3222_p3 = por %p3221_p2, %p3220_p1 }
   0xa   :  { %p3223_p4 = pnand %p3222_p3, %p3216_p0 }
   0xc   :  { %3226 = shalt.err (!%p3223_p4)
}
   0xd   :  { %s3316_s16 = smov 64   ;;  %s3317_s17 = smov 4  }
   0xe   :  { %52 = dma.hbm_to_vmem [thread:$0]  %s3977_s6, 256, %s47_s14, [#allocation6], %s3316_s16, %s3316_s16, %s3317_s17  }
   0xf   :  { %s3318_s20 = smov [#allocation2]  }
  0x10   :  { %s24_s21 = sshll.u32 %s3318_s20, 4  ;;  %s25_s21 = int_to_ptr.vmem [resolvable:$true] %s24_s21 }
  0x11   :  { %s3235_s22 = scalar_lea.vmem %s25_s21, 256  ;;  %p3240_p6 = scmp.lt.s32.totalorder %s25_s21, %s25_s21 }
  0x12   :  { %p3236_p5 = scmp.ne.s32.totalorder %s25_s21, %s3235_s22  ;;  %p3241_p7 = scmp.lt.s32.totalorder %s3235_s22, %s3235_s22 }
  0x14   :  { %p3242_p8 = por %p3241_p7, %p3240_p6 }
  0x16   :  { %p3243_p9 = pnand %p3242_p8, %p3236_p5 }
  0x18   :  { %3246 = shalt.err (!%p3243_p9)
}
  0x19   :  { %s3319_s23 = smov 128   ;;  %s3320_s24 = smov 8  }
  0x1a   :  { %30 = dma.hbm_to_vmem [thread:$0]  %s3971_s0, 256, %s25_s21, [#allocation3], %s3319_s23, %s3319_s23, %s3320_s24  }
  0x1b   :  { %s3321_s6 = smov [#allocation7]   ;;  %s3322_s28 = smov [#allocation8]  }
  0x1c   :  { %s58_s27 = sshll.u32 %s3321_s6, 4  ;;  %s70_s29 = sshll.u32 %s3322_s28, 4  ;;  %s59_s27 = int_to_ptr.vmem [resolvable:$true] %s58_s27  ;;  %s71_s29 = int_to_ptr.vmem [resolvable:$true] %s70_s29 }
  0x1d   :  { %s3255_s30 = scalar_lea.vmem %s59_s27, 256  ;;  %p3260_p11 = scmp.lt.s32.totalorder %s59_s27, %s59_s27 }
  0x1e   :  { %p3256_p10 = scmp.ne.s32.totalorder %s59_s27, %s3255_s30  ;;  %p3261_p12 = scmp.lt.s32.totalorder %s3255_s30, %s3255_s30 }
  0x20   :  { %p3262_p13 = por %p3261_p12, %p3260_p11 }
  0x22   :  { %p3263_p0 = pnand %p3262_p13, %p3256_p10 }
  0x24   :  { %3266 = shalt.err (!%p3263_p0)
}
  0x25   :  { %64 = dma.hbm_to_vmem [thread:$0]  %s3978_s7, 256, %s59_s27, [#allocation6], %s3316_s16, %s3316_s16, %s3317_s17  }
  0x26   :  { %s3275_s0 = scalar_lea.vmem %s71_s29, 256  ;;  %p3280_p2 = scmp.lt.s32.totalorder %s71_s29, %s71_s29 }
  0x27   :  { %p3276_p1 = scmp.ne.s32.totalorder %s71_s29, %s3275_s0  ;;  %p3281_p3 = scmp.lt.s32.totalorder %s3275_s0, %s3275_s0 }
  0x29   :  { %p3282_p4 = por %p3281_p3, %p3280_p2 }
  0x2b   :  { %p3283_p5 = pnand %p3282_p4, %p3276_p1 }
  0x2d   :  { %3286 = shalt.err (!%p3283_p5)
}
  0x2e   :  { %76 = dma.hbm_to_vmem [thread:$0]  %s3979_s8, 256, %s71_s29, [#allocation9], %s3316_s16, %s3316_s16, %s3317_s17  }
  0x2f   :  { %3307 = dma.done.wait [#allocation3], 256  }
  0x30   :  { %3308 = vsyncadd [#allocation3], 4294967040 }
  0x31   :  { %3309 = dma.done.wait [#allocation6], 512  }
  0x32   :  { %3310 = vsyncadd [#allocation6], 4294966784 }
  0x33   :  { %3311 = dma.done.wait [#allocation9], 256  }
  0x34   :  { %3312 = vsyncadd [#allocation9], 4294967040  ;;  %vm98_vm0 = vcmask 261120   ;;  %v3417_v0 = vld [vmem:[#allocation2] sm:$0xff]  ;;  %v3419_v1 = vld [vmem:[#allocation2 + $0x8] sm:$0xff]  ;;  %v3323_v15 = vmov 0.0  }
  0x35   :  { %v99_v2 = vsel %vm98_vm0, %v3417_v0, 0.0  ;;  %v102_v3 = vsel %vm98_vm0, %v3419_v1, 0.0  ;;  %v3103_v14 = vld [vmem:[%s3974_s3 + $0x8] sm:$0xff]   ;;  %2790 = vmatprep.subr.bf16.mxu1 %v3323_v15  ;;  %vm3324_vm1 = vmmov 0   ;;  %v3104_v16 = vld [vmem:[%s3974_s3] sm:$0xff]   ;;  %2816 = vmatprep.subr.bf16.mxu0 %v3323_v15  ;;  %s3325_s21 = smov 88  }
  0x36   :  { %100 = vadd.xlane.f32.xlu0 %v99_v2  ;;  %2794 = vmatprep.mubr.msk.bf16.mxu1 %vm3324_vm1, %v3323_v15  ;;  %v2629_v25 = vld [vmem:[%s3973_s2] ss:$0 sm:$0xff]  ;;  %v2630_v29 = vld [vmem:[%s3973_s2 + $0x1] ss:$0 sm:$0xff]  ;;  %s3326_s22 = smov 96   ;;  %s3327_s25 = smov 120  }
  0x37   :  { %2791 = vmatpush3.bf16.msra.mxu1 %v3103_v14  ;;  %2818 = vmatprep.mubr.msk.bf16.mxu0 %vm3324_vm1, %v3323_v15  ;;  %s3328_s26 = smov 72   ;;  %s3329_s6 = smov 80   ;;  %vm204_vm2 = vcmask 64512   ;;  %vm703_vm3 = vcmask 1043456   ;;  %vm907_vm4 = vcmask 130048   ;;  %vm909_vm5 = vcmask 195584  }
  0x38   :  { %2792 = vmatprep.subr.bf16.mxu1 %v3323_v15  ;;  %s3330_s27 = smov 112   ;;  %s3331_s28 = smov 104  }
  0x39   :  { %s3332_s29 = smov 56   ;;  %s3333_s30 = smov 48  }
  0x3a   :  { %103 = vadd.xlane.f32.xlu0 %v102_v3  ;;  %s3334_s11 = smov 40   ;;  %s3335_s14 = smov 24  }
  0x3b   :  { %2793 = vmatpush3.bf16.msra.mxu1 %v3104_v16  ;;  %s3336_s7 = smov 16  }
  0x3c   :  { %2798 = vmatprep.subr.bf16.mxu1 %v3323_v15 }
  0xbf   :  { %v101_v4 = vpop.xlane.xlu0 %100 }
  0xc0   :  { %v106_v5 = vmul.f32 0.03125, %v101_v4 }
  0xc2   :  { %v108_v6 = vsub.f32 %v3417_v0, %v106_v5 }
  0xc3   :  { %v104_v7 = vpop.xlane.xlu0 %103 }
  0xc4   :  { %v107_v8 = vmul.f32 0.03125, %v104_v7  ;;  %v110_v9 = vmul.f32 %v108_v6, %v108_v6 }
  0xc6   :  { %v109_v10 = vsub.f32 %v3419_v1, %v107_v8  ;;  %v112_v11 = vsel %vm98_vm0, %v110_v9, 0.0 }
  0xc7   :  { %113 = vadd.xlane.f32.xlu1 %v112_v11 }
  0xc8   :  { %v111_v12 = vmul.f32 %v109_v10, %v109_v10 }
  0xca   :  { %v115_v13 = vsel %vm98_vm0, %v111_v12, 0.0 }
  0xcb   :  { %116 = vadd.xlane.f32.xlu1 %v115_v13 }
 0x150   :  { %v114_v17 = vpop.xlane.xlu1 %113 }
 0x151   :  { %v118_v18 = vmul.f32 0.03125, %v114_v17 }
 0x153   :  { %v120_v19 = vadd.f32 1e-05, %v118_v18 }
 0x154   :  { %v117_v20 = vpop.xlane.xlu1 %116 }
 0x155   :  { %3123 = vrsqrt.f32 %v120_v19  ;;  %v119_v21 = vmul.f32 0.03125, %v117_v20 }
 0x157   :  { %v121_v22 = vadd.f32 1e-05, %v119_v21 }
 0x159   :  { %3125 = vrsqrt.f32 %v121_v22 }
 0x162   :  { %v3124_v23 = vpop.eup %3123 }
 0x163   :  { %v124_v24 = vmul.f32 %v3124_v23, %v108_v6 }
 0x165   :  { %v130_v28 = vmul.f32 %v2629_v25, %v124_v24 }
 0x166   :  { %v3126_v26 = vpop.eup %3125 }
 0x167   :  { %v125_v27 = vmul.f32 %v3126_v26, %v109_v10  ;;  %v136_v31 = vadd.f32 %v2630_v29, %v130_v28 }
 0x169   :  { %v131_v30 = vmul.f32 %v2629_v25, %v125_v27 }
 0x16b   :  { %v137_v32 = vadd.f32 %v2630_v29, %v131_v30 }
 0x16d   :  { %v138_v33 = vpack.c.bf16 %v137_v32, %v136_v31 }
 0x16f   :  { %2795 = vmatmul.mubr.msk.bf16.vlgmr.msra.gmra.mxu1 %vm98_vm0, %v138_v33 }
 0x170   :  { %2800 = vmatprep.mubr.msk.bf16.mxu1 %vm3324_vm1, %v3323_v15 }
 0x22f   :  { %v192_v34 = vpop.f32.mrf.mxu1 }
 0x230   :  { %v3452_v35 = vpack.c.bf16 %v192_v34, %v192_v34 }
 0x231   :  { %v2796_v36 = vpop.f32.mrf.mxu1 }
 0x232   :  { %253 = vrot.lane.b32.xlu1 %v3452_v35, %s3325_s21  ;;  %202 = vrot.lane.b32.xlu0 %v3452_v35, %s3326_s22 }
 0x233   :  { %v195_v37 = vpop.f32.mrf.mxu1 }
 0x234   :  { %v3462_v39 = vpack.c.bf16 %v195_v37, %v195_v37 }
 0x235   :  { %v2797_v38 = vpop.f32.mrf.mxu1 }
 0x236   :  { %251 = vrot.lane.b32.xlu1 %v3452_v35, %s3327_s25  ;;  %353 = vrot.lane.b32.xlu0 %v3452_v35, %s3328_s26 }
 0x23a   :  { %303 = vrot.lane.b32.xlu1 %v3452_v35, %s3329_s6  ;;  %403 = vrot.lane.b32.xlu0 %v3462_v39, %s3326_s22 }
 0x23e   :  { %301 = vrot.lane.b32.xlu1 %v3452_v35, %s3330_s27  ;;  %453 = vrot.lane.b32.xlu0 %v3462_v39, %s3325_s21 }
 0x242   :  { %351 = vrot.lane.b32.xlu1 %v3452_v35, %s3331_s28  ;;  %451 = vrot.lane.b32.xlu0 %v3462_v39, %s3327_s25 }
 0x246   :  { %503 = vrot.lane.b32.xlu1 %v3462_v39, %s3329_s6  ;;  %501 = vrot.lane.b32.xlu0 %v3462_v39, %s3330_s27 }
 0x24a   :  { %553 = vrot.lane.b32.xlu1 %v3462_v39, %s3328_s26 }
 0x24e   :  { %551 = vrot.lane.b32.xlu1 %v3462_v39, %s3331_s28 }
 0x2a4   :  { %v254_v40 = vpop.permute.xlu1 %253  ;;  %v203_v41 = vpop.permute.xlu0 %202 }
 0x2a5   :  { %v209_v42 = vsel %vm204_vm2, %v203_v41, 0  ;;  %v259_v48 = vsel %vm204_vm2, %v254_v40, 0 }
 0x2a6   :  { %2799 = vmatpush3.bf16.xpose.msra.mxu1 %v209_v42 }
 0x2a7   :  { %2804 = vmatprep.subr.bf16.mxu1 %v3323_v15 }
 0x2a8   :  { %v252_v43 = vpop.permute.xlu1 %251  ;;  %v354_v44 = vpop.permute.xlu0 %353 }
 0x2a9   :  { %v359_v45 = vsel %vm204_vm2, %v354_v44, 0 }
 0x2aa   :  { %2817 = vmatpush3.bf16.xpose.msra.mxu0 %v359_v45 }
 0x2ab   :  { %2828 = vmatprep.subr.bf16.mxu0 %v3323_v15 }
 0x2ac   :  { %v304_v46 = vpop.permute.xlu1 %303  ;;  %v404_v47 = vpop.permute.xlu0 %403 }
 0x2ad   :  { %2801 = vmatmul.mubr.msk.bf16.vlgmr.msra.gmra.mxu1 %vm204_vm2, %v3452_v35  ;;  %v309_v52 = vsel %vm204_vm2, %v304_v46, 0  ;;  %v409_v57 = vsel %vm204_vm2, %v404_v47, 0 }
 0x2ae   :  { %2805 = vmatpush3.bf16.xpose.msra.mxu1 %v259_v48  ;;  %2806 = vmatprep.mubr.msk.bf16.mxu1 %vm3324_vm1, %v3323_v15 }
 0x2af   :  { %2810 = vmatprep.subr.bf16.mxu1 %v3323_v15 }
 0x2b0   :  { %v302_v49 = vpop.permute.xlu1 %301  ;;  %v454_v50 = vpop.permute.xlu0 %453 }
 0x2b1   :  { %v459_v53 = vsel %vm204_vm2, %v454_v50, 0 }
 0x2b4   :  { %v352_v51 = vpop.permute.xlu1 %351  ;;  %v452_v55 = vpop.permute.xlu0 %451 }
 0x2b5   :  { %2807 = vmatmul.mubr.msk.bf16.vlgmr.msra.gmra.mxu1 %vm204_vm2, %v252_v43  ;;  %2819 = vmatmul.mubr.msk.bf16.vlgmr.msra.gmra.mxu0 %vm204_vm2, %v352_v51 }
 0x2b6   :  { %2829 = vmatpush3.bf16.xpose.msra.mxu0 %v459_v53  ;;  %2811 = vmatpush3.bf16.xpose.msra.mxu1 %v309_v52 }
 0x2b7   :  { %2812 = vmatprep.mubr.msk.bf16.mxu1 %vm3324_vm1, %v3323_v15  ;;  %2830 = vmatprep.mubr.msk.bf16.mxu0 %vm3324_vm1, %v3323_v15 }
 0x2b8   :  { %v504_v54 = vpop.permute.xlu1 %503  ;;  %2822 = vmatprep.subr.bf16.mxu1 %v3323_v15  ;;  %2840 = vmatprep.subr.bf16.mxu0 %v3323_v15  ;;  %v502_v61 = vpop.permute.xlu0 %501 }
 0x2b9   :  { %v509_v60 = vsel %vm204_vm2, %v504_v54, 0 }
 0x2bc   :  { %v554_v56 = vpop.permute.xlu1 %553 }
 0x2bd   :  { %v559_v58 = vsel %vm204_vm2, %v554_v56, 0  ;;  %2813 = vmatmul.mubr.msk.bf16.vlgmr.msra.gmra.mxu1 %vm204_vm2, %v302_v49  ;;  %2831 = vmatmul.mubr.msk.bf16.vlgmr.msra.gmra.mxu0 %vm204_vm2, %v452_v55 }
 0x2be   :  { %2823 = vmatpush3.bf16.xpose.msra.mxu1 %v409_v57  ;;  %2841 = vmatpush3.bf16.xpose.msra.mxu0 %v559_v58 }
 0x2bf   :  { %2824 = vmatprep.mubr.msk.bf16.mxu1 %vm3324_vm1, %v3323_v15  ;;  %2842 = vmatprep.mubr.msk.bf16.mxu0 %vm3324_vm1, %v3323_v15 }
 0x2c0   :  { %2834 = vmatprep.subr.bf16.mxu1 %v3323_v15  ;;  %2852 = vmatprep.subr.bf16.mxu0 %v3323_v15  ;;  %v552_v59 = vpop.permute.xlu1 %551 }
 0x2c5   :  { %2825 = vmatmul.mubr.msk.bf16.vlgmr.msra.gmra.mxu1 %vm204_vm2, %v3462_v39  ;;  %2843 = vmatmul.mubr.msk.bf16.vlgmr.msra.gmra.mxu0 %vm204_vm2, %v552_v59 }
 0x2c6   :  { %2835 = vmatpush3.bf16.xpose.msra.mxu1 %v509_v60  ;;  %2836 = vmatprep.mubr.msk.bf16.mxu1 %vm3324_vm1, %v3323_v15 }
 0x2c7   :  { %2846 = vmatprep.subr.bf16.mxu1 %v3323_v15  ;;  %2854 = vmatprep.mubr.msk.bf16.mxu0 %vm3324_vm1, %v3323_v15 }
 0x2cd   :  { %2837 = vmatmul.mubr.msk.bf16.vlgmr.msra.gmra.mxu1 %vm204_vm2, %v502_v61 }
 0x2ce   :  { %2848 = vmatprep.mubr.msk.bf16.mxu1 %vm3324_vm1, %v3323_v15 }
 0x36d   :  { %v245_v62 = vpop.f32.mrf.mxu1 }
 0x36e   :  { %v3526_v63 = vmul.f32 0.35355338, %v245_v62 }
 0x36f   :  { %v2802_v2 = vpop.f32.mrf.mxu1 }
 0x370   :  { %v609_v3 = vsel %vm204_vm2, %v3526_v63, -inf }
 0x371   :  { %610 = vmax.xlane.f32.xlu0 %v609_v3  ;;  %v248_v4 = vpop.f32.mrf.mxu1 }
 0x373   :  { %v2803_v5 = vpop.f32.mrf.mxu1 }
 0x375   :  { %v295_v6 = vpop.f32.mrf.mxu1  ;;  %v395_v7 = vpop.f32.mrf.mxu0 }
 0x376   :  { %v3530_v8 = vmul.f32 0.35355338, %v295_v6  ;;  %v604_v9 = vmul.f32 0.35355338, %v395_v7 }
 0x377   :  { %v2808_v10 = vpop.f32.mrf.mxu1  ;;  %v2820_v11 = vpop.f32.mrf.mxu0 }
 0x378   :  { %v618_v12 = vsel %vm204_vm2, %v604_v9, -inf  ;;  %v612_v13 = vsel %vm204_vm2, %v3530_v8, -inf }
 0x379   :  { %v398_v14 = vpop.f32.mrf.mxu0  ;;  %619 = vmax.xlane.f32.xlu0 %v618_v12  ;;  %613 = vmax.xlane.f32.xlu1 %v612_v13  ;;  %v298_v16 = vpop.f32.mrf.mxu1 }
 0x37b   :  { %v2809_v17 = vpop.f32.mrf.mxu1  ;;  %v2821_v18 = vpop.f32.mrf.mxu0 }
 0x37d   :  { %v345_v19 = vpop.f32.mrf.mxu1  ;;  %v495_v20 = vpop.f32.mrf.mxu0 }
 0x37e   :  { %v603_v21 = vmul.f32 0.35355338, %v345_v19  ;;  %v606_v22 = vmul.f32 0.35355338, %v495_v20 }
 0x37f   :  { %v2814_v23 = vpop.f32.mrf.mxu1  ;;  %v2832_v24 = vpop.f32.mrf.mxu0 }
 0x380   :  { %v624_v25 = vsel %vm204_vm2, %v606_v22, -inf  ;;  %v615_v26 = vsel %vm204_vm2, %v603_v21, -inf }
 0x381   :  { %v498_v27 = vpop.f32.mrf.mxu0  ;;  %625 = vmax.xlane.f32.xlu1 %v624_v25  ;;  %616 = vmax.xlane.f32.xlu0 %v615_v26  ;;  %v348_v28 = vpop.f32.mrf.mxu1 }
 0x383   :  { %v2815_v29 = vpop.f32.mrf.mxu1  ;;  %v2833_v30 = vpop.f32.mrf.mxu0 }
 0x385   :  { %v445_v31 = vpop.f32.mrf.mxu1  ;;  %v595_v32 = vpop.f32.mrf.mxu0 }
 0x386   :  { %v3537_v33 = vmul.f32 0.35355338, %v445_v31  ;;  %v3539_v34 = vmul.f32 0.35355338, %v595_v32 }
 0x387   :  { %v2826_v36 = vpop.f32.mrf.mxu1  ;;  %v2844_v37 = vpop.f32.mrf.mxu0 }
 0x388   :  { %v630_v38 = vsel %vm204_vm2, %v3539_v34, -inf  ;;  %v621_v40 = vsel %vm204_vm2, %v3537_v33, -inf }
 0x389   :  { %v598_v41 = vpop.f32.mrf.mxu0  ;;  %631 = vmax.xlane.f32.xlu1 %v630_v38  ;;  %622 = vmax.xlane.f32.xlu0 %v621_v40  ;;  %v448_v42 = vpop.f32.mrf.mxu1 }
 0x38b   :  { %v2827_v43 = vpop.f32.mrf.mxu1  ;;  %v2845_v44 = vpop.f32.mrf.mxu0 }
 0x38d   :  { %v545_v45 = vpop.f32.mrf.mxu1 }
 0x38e   :  { %v3545_v46 = vmul.f32 0.35355338, %v545_v45 }
 0x38f   :  { %v2838_v47 = vpop.f32.mrf.mxu1 }
 0x390   :  { %v627_v48 = vsel %vm204_vm2, %v3545_v46, -inf }
 0x391   :  { %628 = vmax.xlane.f32.xlu0 %v627_v48  ;;  %v548_v49 = vpop.f32.mrf.mxu1 }
 0x393   :  { %v2839_v50 = vpop.f32.mrf.mxu1 }
 0x39a   :  { %748 = vrot.lane.b32.xlu1 %v3452_v35, %s3332_s29 }
 0x39e   :  { %797 = vrot.lane.b32.xlu1 %v3452_v35, %s3333_s30 }
 0x3a2   :  { %846 = vrot.lane.b32.xlu1 %v3452_v35, %s3334_s11 }
 0x3a7   :  { %698 = vrot.lane.b32.xlu0 %v3452_v35, %s3316_s16 }
 0x3fa   :  { %v611_v51 = vpop.xlane.xlu0 %610 }
 0x3fb   :  { %v633_v52 = vsub.f32 %v3526_v63, %v611_v51 }
 0x3fd   :  { %v641_v53 = vmul.f32 1.442695, %v633_v52 }
 0x3ff   :  { %3127 = vpow2.f32 %v641_v53 }
 0x402   :  { %v620_v54 = vpop.xlane.xlu0 %619  ;;  %v614_v55 = vpop.xlane.xlu1 %613 }
 0x403   :  { %v636_v56 = vsub.f32 %v604_v9, %v620_v54  ;;  %v634_v57 = vsub.f32 %v3530_v8, %v614_v55 }
 0x405   :  { %v647_v58 = vmul.f32 1.442695, %v636_v56  ;;  %v643_v59 = vmul.f32 1.442695, %v634_v57 }
 0x407   :  { %3129 = vpow2.f32 %v647_v58 }
 0x408   :  { %3131 = vpow2.f32 %v643_v59 }
 0x40a   :  { %v626_v60 = vpop.xlane.xlu1 %625  ;;  %v617_v61 = vpop.xlane.xlu0 %616 }
 0x40b   :  { %v638_v62 = vsub.f32 %v606_v22, %v626_v60  ;;  %v635_v2 = vsub.f32 %v603_v21, %v617_v61 }
 0x40c   :  { %v3128_v3 = vpop.eup %3127 }
 0x40d   :  { %v651_v35 = vmul.f32 1.442695, %v638_v62  ;;  %v645_v4 = vmul.f32 1.442695, %v635_v2  ;;  %v657_v63 = vsel %vm204_vm2, %v3128_v3, 0.0 }
 0x40e   :  { %658 = vadd.xlane.f32.xlu0 %v657_v63 }
 0x40f   :  { %3133 = vpow2.f32 %v651_v35 }
 0x410   :  { %3135 = vpow2.f32 %v645_v4 }
 0x412   :  { %v632_v5 = vpop.xlane.xlu1 %631  ;;  %v623_v9 = vpop.xlane.xlu0 %622 }
 0x413   :  { %v640_v21 = vsub.f32 %v3539_v34, %v632_v5  ;;  %v637_v22 = vsub.f32 %v3537_v33, %v623_v9 }
 0x414   :  { %v3560_v6 = vpop.eup %3129 }
 0x415   :  { %v666_v7 = vsel %vm204_vm2, %v3560_v6, 0.0  ;;  %v3564_v8 = vpop.eup %3131  ;;  %v655_v23 = vmul.f32 1.442695, %v640_v21  ;;  %v649_v24 = vmul.f32 1.442695, %v637_v22 }
 0x416   :  { %667 = vadd.xlane.f32.xlu1 %v666_v7  ;;  %v749_v10 = vpop.permute.xlu1 %748  ;;  %v660_v12 = vsel %vm204_vm2, %v3564_v8, 0.0 }
 0x417   :  { %v754_v11 = vsel %vm703_vm3, %v749_v10, 0  ;;  %3137 = vpow2.f32 %v655_v23 }
 0x418   :  { %2853 = vmatpush3.bf16.msra.mxu0 %v754_v11  ;;  %3139 = vpow2.f32 %v649_v24 }
 0x419   :  { %2864 = vmatprep.subr.bf16.mxu0 %v3323_v15 }
 0x41a   :  { %661 = vadd.xlane.f32.xlu1 %v660_v12  ;;  %v629_v13 = vpop.xlane.xlu0 %628  ;;  %v798_v33 = vpop.permute.xlu1 %797 }
 0x41b   :  { %v639_v25 = vsub.f32 %v3545_v46, %v629_v13  ;;  %v803_v44 = vsel %vm703_vm3, %v798_v33, 0 }
 0x41c   :  { %v3570_v14 = vpop.eup %3133 }
 0x41d   :  { %v3136_v16 = vpop.eup %3135  ;;  %v672_v17 = vsel %vm204_vm2, %v3570_v14, 0.0  ;;  %v653_v26 = vmul.f32 1.442695, %v639_v25 }
 0x41e   :  { %673 = vadd.xlane.f32.xlu1 %v672_v17  ;;  %v663_v18 = vsel %vm204_vm2, %v3136_v16, 0.0  ;;  %v699_v19 = vpop.permute.xlu0 %698  ;;  %v847_v36 = vpop.permute.xlu1 %846 }
 0x41f   :  { %664 = vadd.xlane.f32.xlu0 %v663_v18  ;;  %v705_v20 = vsel %vm703_vm3, %v699_v19, 0  ;;  %3141 = vpow2.f32 %v653_v26  ;;  %v852_v50 = vsel %vm703_vm3, %v847_v36, 0 }
 0x420   :  { %2847 = vmatpush3.bf16.msra.mxu1 %v705_v20 }
 0x421   :  { %2858 = vmatprep.subr.bf16.mxu1 %v3323_v15 }
 0x424   :  { %v3584_v27 = vpop.eup %3137 }
 0x425   :  { %v3586_v28 = vpop.eup %3139  ;;  %v678_v29 = vsel %vm204_vm2, %v3584_v27, 0.0 }
 0x426   :  { %v669_v30 = vsel %vm204_vm2, %v3586_v28, 0.0 }
 0x42c   :  { %v3592_v31 = vpop.eup %3141 }
 0x42d   :  { %v675_v32 = vsel %vm204_vm2, %v3592_v31, 0.0 }
 0x42f   :  { %961 = vrot.lane.b32.xlu1 %v3462_v39, %s3332_s29 }
 0x435   :  { %912 = vrot.lane.b32.xlu0 %v3462_v39, %s3316_s16 }
 0x453   :  { %679 = vadd.xlane.f32.xlu1 %v678_v29 }
 0x454   :  { %670 = vadd.xlane.f32.xlu0 %v669_v30 }
 0x458   :  { %676 = vadd.xlane.f32.xlu0 %v675_v32 }
 0x464   :  { %1059 = vrot.lane.b32.xlu1 %v3462_v39, %s3334_s11 }
 0x46e   :  { %1010 = vrot.lane.b32.xlu0 %v3462_v39, %s3333_s30 }
 0x497   :  { %v659_v34 = vpop.xlane.xlu0 %658 }
 0x498   :  { %3143 = vrcp.f32 %v659_v34 }
 0x49f   :  { %v668_v37 = vpop.xlane.xlu1 %667 }
 0x4a3   :  { %v662_v38 = vpop.xlane.xlu1 %661 }
 0x4a4   :  { %3145 = vrcp.f32 %v662_v38  ;;  %v3105_v38 = vld [vmem:[%s3975_s4 + $0x8] sm:$0xff]  }
 0x4a5   :  { %v3144_v40 = vpop.eup %3143  ;;  %3147 = vrcp.f32 %v668_v37 }
 0x4a6   :  { %v689_v41 = vmul.f32 %v3144_v40, %v3128_v3 }
 0x4a7   :  { %v674_v39 = vpop.xlane.xlu1 %673 }
 0x4a8   :  { %v665_v42 = vpop.xlane.xlu0 %664  ;;  %v697_v43 = vpack.c.bf16 %v689_v41, %v689_v41 }
 0x4a9   :  { %3149 = vrcp.f32 %v665_v42 }
 0x4aa   :  { %2849 = vmatmul.mubr.msk.bf16.vlgmr.msra.gmra.mxu1 %vm204_vm2, %v697_v43  ;;  %3151 = vrcp.f32 %v674_v39  ;;  %v3106_v43 = vld [vmem:[%s3975_s4] sm:$0xff]   ;;  %s3337_s4 = smov [#allocation10]  }
 0x4ab   :  { %2859 = vmatpush3.bf16.msra.mxu1 %v803_v44  ;;  %2860 = vmatprep.mubr.msk.bf16.mxu1 %vm3324_vm1, %v3323_v15  ;;  %v962_v55 = vpop.permute.xlu1 %961 }
 0x4ac   :  { %2870 = vmatprep.subr.bf16.mxu1 %v3323_v15  ;;  %v913_v52 = vpop.permute.xlu0 %912  ;;  %v967_v59 = vsel %vm703_vm3, %v962_v55, 0 }
 0x4ad   :  { %v918_v56 = vsel %vm703_vm3, %v913_v52, 0 }
 0x4b1   :  { %v3146_v45 = vpop.eup %3145 }
 0x4b2   :  { %v690_v46 = vmul.f32 %v3146_v45, %v3564_v8  ;;  %v3148_v48 = vpop.eup %3147 }
 0x4b3   :  { %v692_v53 = vmul.f32 %v3148_v48, %v3560_v6 }
 0x4b4   :  { %v747_v47 = vpack.c.bf16 %v690_v46, %v690_v46 }
 0x4b5   :  { %v845_v57 = vpack.c.bf16 %v692_v53, %v692_v53 }
 0x4b6   :  { %v3150_v49 = vpop.eup %3149  ;;  %2855 = vmatmul.mubr.msk.bf16.vlgmr.msra.gmra.mxu0 %vm204_vm2, %v747_v47 }
 0x4b7   :  { %2865 = vmatpush3.bf16.msra.mxu0 %v852_v50  ;;  %v691_v51 = vmul.f32 %v3150_v49, %v3136_v16  ;;  %2866 = vmatprep.mubr.msk.bf16.mxu0 %vm3324_vm1, %v3323_v15  ;;  %v3152_v58 = vpop.eup %3151 }
 0x4b8   :  { %2876 = vmatprep.subr.bf16.mxu0 %v3323_v15  ;;  %v694_v60 = vmul.f32 %v3152_v58, %v3570_v14 }
 0x4b9   :  { %v796_v54 = vpack.c.bf16 %v691_v51, %v691_v51 }
 0x4ba   :  { %v960_v61 = vpack.c.bf16 %v694_v60, %v694_v60 }
 0x4bb   :  { %2861 = vmatmul.mubr.msk.bf16.vlgmr.msra.gmra.mxu1 %vm204_vm2, %v796_v54  ;;  %v95_v54 = vld [vmem:[%s3972_s1 + $0x8] sm:$0xff] }
 0x4bc   :  { %2871 = vmatpush3.bf16.msra.mxu1 %v918_v56  ;;  %2872 = vmatprep.mubr.msk.bf16.mxu1 %vm3324_vm1, %v3323_v15  ;;  %v1234_v55 = vsel %vm98_vm0, %v95_v54, 0.0  ;;  %v94_v56 = vld [vmem:[%s3972_s1] sm:$0xff] }
 0x4bd   :  { %2882 = vmatprep.subr.bf16.mxu1 %v3323_v15 }
 0x4be   :  { %2867 = vmatmul.mubr.msk.bf16.vlgmr.msra.gmra.mxu0 %vm204_vm2, %v845_v57  ;;  %v1231_v57 = vsel %vm98_vm0, %v94_v56, 0.0 }
 0x4bf   :  { %2877 = vmatpush3.bf16.msra.mxu0 %v967_v59  ;;  %2878 = vmatprep.mubr.msk.bf16.mxu0 %vm3324_vm1, %v3323_v15 }
 0x4c0   :  { %2888 = vmatprep.subr.bf16.mxu0 %v3323_v15 }
 0x4c6   :  { %2879 = vmatmul.mubr.msk.bf16.vlgmr.msra.gmra.mxu0 %vm204_vm2, %v960_v61 }
 0x4c7   :  { %2890 = vmatprep.mubr.msk.bf16.mxu0 %vm3324_vm1, %v3323_v15 }
 0x4dc   :  { %v680_v62 = vpop.xlane.xlu1 %679 }
 0x4dd   :  { %3153 = vrcp.f32 %v680_v62  ;;  %v671_v2 = vpop.xlane.xlu0 %670 }
 0x4de   :  { %3155 = vrcp.f32 %v671_v2 }
 0x4e0   :  { %v1060_v3 = vpop.permute.xlu1 %1059 }
 0x4e1   :  { %v1065_v35 = vsel %vm703_vm3, %v1060_v3, 0  ;;  %v677_v4 = vpop.xlane.xlu0 %676 }
 0x4e2   :  { %3157 = vrcp.f32 %v677_v4  ;;  %2889 = vmatpush3.bf16.msra.mxu0 %v1065_v35 }
 0x4e3   :  { %2902 = vmatprep.subr.bf16.mxu0 %v3323_v15 }
 0x4e5   :  { %v1011_v8 = vpop.permute.xlu0 %1010 }
 0x4e6   :  { %v1016_v12 = vsel %vm703_vm3, %v1011_v8, 0 }
 0x4ea   :  { %v3154_v63 = vpop.eup %3153 }
 0x4eb   :  { %v3156_v5 = vpop.eup %3155  ;;  %v696_v6 = vmul.f32 %v3154_v63, %v3584_v27 }
 0x4ec   :  { %v693_v7 = vmul.f32 %v3156_v5, %v3586_v28 }
 0x4ed   :  { %v1058_v9 = vpack.c.bf16 %v696_v6, %v696_v6 }
 0x4ee   :  { %v911_v10 = vpack.c.bf16 %v693_v7, %v693_v7 }
 0x4ef   :  { %v3158_v11 = vpop.eup %3157  ;;  %2891 = vmatmul.mubr.msk.bf16.vlgmr.msra.gmra.mxu0 %vm204_vm2, %v1058_v9 }
 0x4f0   :  { %2873 = vmatmul.mubr.msk.bf16.vlgmr.msra.gmra.mxu1 %vm204_vm2, %v911_v10  ;;  %2906 = vmatprep.mubr.msk.bf16.mxu0 %vm3324_vm1, %v3323_v15  ;;  %v695_v13 = vmul.f32 %v3158_v11, %v3592_v31 }
 0x4f1   :  { %2883 = vmatpush3.bf16.msra.mxu1 %v1016_v12  ;;  %2884 = vmatprep.mubr.msk.bf16.mxu1 %vm3324_vm1, %v3323_v15 }
 0x4f2   :  { %2894 = vmatprep.subr.bf16.mxu1 %v3323_v15  ;;  %v1009_v14 = vpack.c.bf16 %v695_v13, %v695_v13 }
 0x4f8   :  { %2885 = vmatmul.mubr.msk.bf16.vlgmr.msra.gmra.mxu1 %vm204_vm2, %v1009_v14 }
 0x4f9   :  { %2898 = vmatprep.mubr.msk.bf16.mxu1 %vm3324_vm1, %v3323_v15  ;;  %2895 = vmatpush3.bf16.msra.mxu1 %v3105_v38 }
 0x4fa   :  { %2896 = vmatprep.subr.bf16.mxu1 %v3323_v15 }
 0x4fd   :  { %2897 = vmatpush3.bf16.msra.mxu1 %v3106_v43 }
 0x4fe   :  { %2910 = vmatprep.subr.bf16.mxu1 %v3323_v15 }
 0x56a   :  { %v741_v16 = vpop.f32.mrf.mxu1 }
 0x56c   :  { %v2850_v17 = vpop.f32.mrf.mxu1 }
 0x56e   :  { %v744_v18 = vpop.f32.mrf.mxu1 }
 0x56f   :  { %v2650_v18 = vld [vmem:[%s3973_s2 + $0x8] ss:$0 sm:$0xff] }
 0x570   :  { %v2851_v19 = vpop.f32.mrf.mxu1 }
 0x576   :  { %v790_v20 = vpop.f32.mrf.mxu0 }
 0x578   :  { %v2856_v21 = vpop.f32.mrf.mxu0 }
 0x57a   :  { %v793_v22 = vpop.f32.mrf.mxu0 }
 0x57b   :  { %v839_v23 = vpop.f32.mrf.mxu1 }
 0x57c   :  { %v2857_v24 = vpop.f32.mrf.mxu0 }
 0x57d   :  { %v2862_v25 = vpop.f32.mrf.mxu1 }
 0x57e   :  { %v888_v26 = vpop.f32.mrf.mxu0 }
 0x57f   :  { %v842_v27 = vpop.f32.mrf.mxu1 }
 0x580   :  { %v2868_v28 = vpop.f32.mrf.mxu0 }
 0x581   :  { %v2863_v29 = vpop.f32.mrf.mxu1 }
 0x582   :  { %v891_v30 = vpop.f32.mrf.mxu0 }
 0x584   :  { %v2869_v31 = vpop.f32.mrf.mxu0 }
 0x586   :  { %v1003_v32 = vpop.f32.mrf.mxu0 }
 0x587   :  { %v3073_v33 = vpack.i.bf16 %v1003_v32, %v790_v20 }
 0x588   :  { %v2880_v34 = vpop.f32.mrf.mxu0 }
 0x589   :  { %3074 = vrot.lane.b32.xlu0 %v3073_v33, %s3320_s24  ;;  %v3108_v33 = vld [vmem:[#allocation5] sm:$0xff]  }
 0x58a   :  { %v1006_v36 = vpop.f32.mrf.mxu0 }
 0x58c   :  { %v2881_v37 = vpop.f32.mrf.mxu0 }
 0x5af   :  { %v1101_v40 = vpop.f32.mrf.mxu0 }
 0x5b0   :  { %v954_v41 = vpop.f32.mrf.mxu1  ;;  %v3083_v42 = vpack.i.bf16 %v1101_v40, %v888_v26 }
 0x5b1   :  { %v2892_v44 = vpop.f32.mrf.mxu0 }
 0x5b2   :  { %v2874_v39 = vpop.f32.mrf.mxu1  ;;  %3084 = vrot.lane.b32.xlu0 %v3083_v42, %s3335_s14 }
 0x5b3   :  { %v1104_v45 = vpop.f32.mrf.mxu0 }
 0x5b4   :  { %v957_v46 = vpop.f32.mrf.mxu1 }
 0x5b5   :  { %v2893_v47 = vpop.f32.mrf.mxu0 }
 0x5b6   :  { %v2875_v48 = vpop.f32.mrf.mxu1 }
 0x5b8   :  { %v1052_v49 = vpop.f32.mrf.mxu1 }
 0x5b9   :  { %v3078_v50 = vpack.i.bf16 %v1052_v49, %v839_v23 }
 0x5ba   :  { %v2886_v51 = vpop.f32.mrf.mxu1 }
 0x5bb   :  { %3079 = vrot.lane.b32.xlu1 %v3078_v50, %s3336_s7 }
 0x5bc   :  { %v1055_v52 = vpop.f32.mrf.mxu1 }
 0x5bd   :  { %v2656_v52 = vld [vmem:[%s3973_s2 + $0x4] ss:$0 sm:$0xff] }
 0x5be   :  { %v2887_v53 = vpop.f32.mrf.mxu1 }
 0x5d1   :  { %1235 = vadd.xlane.f32.xlu0 %v1234_v55 }
 0x5df   :  { %1232 = vadd.xlane.f32.xlu1 %v1231_v57 }
 0x5fb   :  { %v3075_v58 = vpop.permute.xlu0 %3074 }
 0x5fc   :  { %v3077_v59 = vunpack.i.h.bf16 %v3075_v58  ;;  %v3076_v60 = vunpack.i.l.bf16 %v3075_v58 }
 0x5fe   :  { %v906_v35 = vsel %vm204_vm2, %v741_v16, %v3076_v60  ;;  %v1119_v4 = vsel %vm204_vm2, %v954_v41, %v3077_v59 }
 0x624   :  { %v3085_v61 = vpop.permute.xlu0 %3084 }
 0x625   :  { %v3087_v63 = vunpack.i.h.bf16 %v3085_v61  ;;  %v3086_v5 = vunpack.i.l.bf16 %v3085_v61  ;;  %v3109_v61 = vld [vmem:[%s3976_s5 + $0x8] sm:$0xff]  }
 0x626   :  { %2903 = vmatpush3.bf16.msra.mxu0 %v3109_v61 }
 0x627   :  { %2904 = vmatprep.subr.bf16.mxu0 %v3323_v15 }
 0x62d   :  { %v3080_v62 = vpop.permute.xlu1 %3079 }
 0x62e   :  { %v3082_v2 = vunpack.i.h.bf16 %v3080_v62  ;;  %v3081_v3 = vunpack.i.l.bf16 %v3080_v62  ;;  %v3110_v62 = vld [vmem:[%s3976_s5] sm:$0xff]  }
 0x62f   :  { %2905 = vmatpush3.bf16.msra.mxu0 %v3110_v62 }
 0x630   :  { %v1120_v6 = vsel %vm907_vm4, %v1119_v4, %v3082_v2  ;;  %v908_v7 = vsel %vm907_vm4, %v906_v35, %v3081_v3  ;;  %2918 = vmatprep.subr.bf16.mxu0 %v3323_v15 }
 0x631   :  { %v1121_v8 = vsel %vm909_vm5, %v1120_v6, %v3087_v63  ;;  %v910_v9 = vsel %vm909_vm5, %v908_v7, %v3086_v5 }
 0x632   :  { %v1122_v10 = vpack.c.bf16 %v1121_v8, %v910_v9  ;;  %v2654_v8 = vld [vmem:[%s3973_s2 + $0x2] ss:$0 sm:$0xff] }
 0x634   :  { %2899 = vmatmul.mubr.msk.bf16.vlgmr.msra.gmra.mxu1 %vm98_vm0, %v1122_v10 }
 0x635   :  { %2914 = vmatprep.mubr.msk.bf16.mxu1 %vm3324_vm1, %v3323_v15 }
 0x65a   :  { %v1236_v17 = vpop.xlane.xlu0 %1235 }
 0x65b   :  { %v1238_v19 = vmul.f32 0.03125, %v1236_v17 }
 0x65d   :  { %v1240_v24 = vsub.f32 %v95_v54, %v1238_v19 }
 0x65f   :  { %v1242_v30 = vmul.f32 %v1240_v24, %v1240_v24 }
 0x661   :  { %v1246_v32 = vsel %vm98_vm0, %v1242_v30, 0.0 }
 0x668   :  { %v1233_v11 = vpop.xlane.xlu1 %1232 }
 0x669   :  { %v1237_v12 = vmul.f32 0.03125, %v1233_v11 }
 0x66b   :  { %v1239_v13 = vsub.f32 %v94_v56, %v1237_v12  ;;  %v2657_v56 = vld [vmem:[%s3973_s2 + $0x5] ss:$0 sm:$0xff]  ;;  %v2655_v12 = vld [vmem:[%s3973_s2 + $0x3] ss:$0 sm:$0xff] }
 0x66d   :  { %v1241_v14 = vmul.f32 %v1239_v13, %v1239_v13 }
 0x66f   :  { %v1243_v16 = vsel %vm98_vm0, %v1241_v14, 0.0 }
 0x670   :  { %1244 = vadd.xlane.f32.xlu1 %v1243_v16 }
 0x6f4   :  { %v1180_v20 = vpop.f32.mrf.mxu1 }
 0x6f5   :  { %v1181_v21 = vadd.f32 %v2650_v18, %v1180_v20 }
 0x6f6   :  { %v2900_v22 = vpop.f32.mrf.mxu1 }
 0x6f7   :  { %v3675_v23 = vadd.f32 %v1181_v21, %v3417_v0  ;;  %v3107_v0 = vld [vmem:[#allocation5 + $0x8] sm:$0xff]  }
 0x6f8   :  { %v1183_v25 = vpop.f32.mrf.mxu1  ;;  %2911 = vmatpush3.bf16.msra.mxu1 %v3107_v0 }
 0x6f9   :  { %v1184_v26 = vadd.f32 %v2650_v18, %v1183_v25  ;;  %v1191_v27 = vsel %vm98_vm0, %v3675_v23, 0.0  ;;  %2912 = vmatprep.subr.bf16.mxu1 %v3323_v15  ;;  %v1245_v34 = vpop.xlane.xlu1 %1244 }
 0x6fa   :  { %1192 = vadd.xlane.f32.xlu0 %v1191_v27  ;;  %v2901_v28 = vpop.f32.mrf.mxu1  ;;  %v1249_v36 = vmul.f32 0.03125, %v1245_v34 }
 0x6fb   :  { %v3680_v29 = vadd.f32 %v1184_v26, %v3419_v1 }
 0x6fc   :  { %2913 = vmatpush3.bf16.msra.mxu1 %v3108_v33  ;;  %v1251_v38 = vadd.f32 1e-05, %v1249_v36 }
 0x6fd   :  { %v1194_v31 = vsel %vm98_vm0, %v3680_v29, 0.0  ;;  %2924 = vmatprep.subr.bf16.mxu1 %v3323_v15 }
 0x6fe   :  { %1195 = vadd.xlane.f32.xlu0 %v1194_v31  ;;  %3159 = vrsqrt.f32 %v1251_v38 }
 0x702   :  { %1247 = vadd.xlane.f32.xlu0 %v1246_v32 }
 0x70b   :  { %v3160_v50 = vpop.eup %3159 }
 0x70c   :  { %v1255_v51 = vmul.f32 %v3160_v50, %v1239_v13 }
 0x70e   :  { %v1261_v55 = vmul.f32 %v2656_v52, %v1255_v51 }
 0x710   :  { %v1267_v58 = vadd.f32 %v2657_v56, %v1261_v55 }
 0x783   :  { %v1193_v1 = vpop.xlane.xlu0 %1192 }
 0x784   :  { %v1197_v37 = vmul.f32 0.03125, %v1193_v1 }
 0x786   :  { %v1199_v40 = vsub.f32 %v3675_v23, %v1197_v37 }
 0x787   :  { %v1196_v41 = vpop.xlane.xlu0 %1195 }
 0x788   :  { %v1198_v42 = vmul.f32 0.03125, %v1196_v41  ;;  %v1201_v43 = vmul.f32 %v1199_v40, %v1199_v40 }
 0x78a   :  { %v1200_v44 = vsub.f32 %v3680_v29, %v1198_v42  ;;  %v1203_v39 = vsel %vm98_vm0, %v1201_v43, 0.0 }
 0x78b   :  { %1204 = vadd.xlane.f32.xlu1 %v1203_v39  ;;  %v1248_v45 = vpop.xlane.xlu0 %1247 }
 0x78c   :  { %v1250_v46 = vmul.f32 0.03125, %v1248_v45  ;;  %v1202_v47 = vmul.f32 %v1200_v44, %v1200_v44 }
 0x78e   :  { %v1252_v48 = vadd.f32 1e-05, %v1250_v46  ;;  %v1206_v49 = vsel %vm98_vm0, %v1202_v47, 0.0 }
 0x78f   :  { %1207 = vadd.xlane.f32.xlu0 %v1206_v49 }
 0x790   :  { %3161 = vrsqrt.f32 %v1252_v48 }
 0x79d   :  { %v3162_v53 = vpop.eup %3161 }
 0x79e   :  { %v1256_v54 = vmul.f32 %v3162_v53, %v1240_v24 }
 0x7a0   :  { %v1262_v57 = vmul.f32 %v2656_v52, %v1256_v54 }
 0x7a2   :  { %v1268_v59 = vadd.f32 %v2657_v56, %v1262_v57 }
 0x7a4   :  { %v1330_v60 = vpack.c.bf16 %v1268_v59, %v1267_v58 }
 0x7a6   :  { %2915 = vmatmul.mubr.msk.bf16.vlgmr.msra.gmra.mxu1 %vm98_vm0, %v1330_v60 }
 0x7a7   :  { %2926 = vmatprep.mubr.msk.bf16.mxu1 %vm3324_vm1, %v3323_v15 }
 0x814   :  { %v1205_v2 = vpop.xlane.xlu1 %1204 }
 0x815   :  { %v1209_v3 = vmul.f32 0.03125, %v1205_v2 }
 0x817   :  { %v1211_v35 = vadd.f32 1e-05, %v1209_v3 }
 0x818   :  { %v1208_v4 = vpop.xlane.xlu0 %1207 }
 0x819   :  { %3163 = vrsqrt.f32 %v1211_v35  ;;  %v1210_v63 = vmul.f32 0.03125, %v1208_v4 }
 0x81b   :  { %v1212_v5 = vadd.f32 1e-05, %v1210_v63 }
 0x81d   :  { %3165 = vrsqrt.f32 %v1212_v5 }
 0x826   :  { %v3164_v6 = vpop.eup %3163 }
 0x827   :  { %v1215_v7 = vmul.f32 %v3164_v6, %v1199_v40 }
 0x829   :  { %v1221_v11 = vmul.f32 %v2654_v8, %v1215_v7 }
 0x82a   :  { %v3166_v9 = vpop.eup %3165 }
 0x82b   :  { %v1216_v10 = vmul.f32 %v3166_v9, %v1200_v44  ;;  %v1227_v14 = vadd.f32 %v2655_v12, %v1221_v11 }
 0x82d   :  { %v1222_v13 = vmul.f32 %v2654_v8, %v1216_v10 }
 0x82f   :  { %v1228_v16 = vadd.f32 %v2655_v12, %v1222_v13 }
 0x831   :  { %v1269_v17 = vpack.c.bf16 %v1228_v16, %v1227_v14 }
 0x833   :  { %2907 = vmatmul.mubr.msk.bf16.vlgmr.msra.gmra.mxu0 %vm98_vm0, %v1269_v17 }
 0x834   :  { %2920 = vmatprep.mubr.msk.bf16.mxu0 %vm3324_vm1, %v3323_v15 }
 0x866   :  { %v1384_v18 = vpop.f32.mrf.mxu1 }
 0x867   :  { %v3717_v19 = vpack.c.bf16 %v1384_v18, %v1384_v18 }
 0x868   :  { %v2916_v20 = vpop.f32.mrf.mxu1 }
 0x869   :  { %1494 = vrot.lane.b32.xlu0 %v3717_v19, %s3330_s27  ;;  %1444 = vrot.lane.b32.xlu1 %v3717_v19, %s3327_s25  ;;  %v1398_v21 = vsel %vm204_vm2, %v3717_v19, 0 }
 0x86a   :  { %v1387_v22 = vpop.f32.mrf.mxu1  ;;  %2919 = vmatpush3.bf16.xpose.msra.mxu0 %v1398_v21 }
 0x86b   :  { %2930 = vmatprep.subr.bf16.mxu0 %v3323_v15  ;;  %v3734_v33 = vpack.c.bf16 %v1387_v22, %v1387_v22 }
 0x86c   :  { %v2917_v24 = vpop.f32.mrf.mxu1 }
 0x86d   :  { %1544 = vrot.lane.b32.xlu1 %v3717_v19, %s3331_s28  ;;  %v1598_v42 = vsel %vm204_vm2, %v3734_v33, 0 }
 0x8db   :  { %v1445_v25 = vpop.permute.xlu1 %1444  ;;  %v1495_v28 = vpop.permute.xlu0 %1494 }
 0x8dc   :  { %v1450_v26 = vsel %vm204_vm2, %v1445_v25, 0  ;;  %v1500_v32 = vsel %vm204_vm2, %v1495_v28, 0 }
 0x8dd   :  { %2925 = vmatpush3.bf16.xpose.msra.mxu1 %v1450_v26 }
 0x8de   :  { %2936 = vmatprep.subr.bf16.mxu1 %v3323_v15 }
 0x8df   :  { %v1545_v1 = vpop.permute.xlu1 %1544 }
 0x8e0   :  { %v1550_v38 = vsel %vm204_vm2, %v1545_v1, 0 }
 0x8f3   :  { %v1323_v27 = vpop.f32.mrf.mxu0 }
 0x8f4   :  { %v1392_v30 = vpack.c.bf16 %v1323_v27, %v1323_v27 }
 0x8f5   :  { %v2908_v31 = vpop.f32.mrf.mxu0 }
 0x8f6   :  { %1542 = vrot.lane.b32.xlu0 %v1392_v30, %s3331_s28  ;;  %1441 = vrot.lane.b32.xlu1 %v1392_v30, %s3327_s25 }
 0x8f7   :  { %2921 = vmatmul.mubr.msk.bf16.vlgmr.msra.gmra.mxu0 %vm204_vm2, %v1392_v30  ;;  %v1326_v0 = vpop.f32.mrf.mxu0 }
 0x8f8   :  { %2931 = vmatpush3.bf16.xpose.msra.mxu0 %v1500_v32  ;;  %2932 = vmatprep.mubr.msk.bf16.mxu0 %vm3324_vm1, %v3323_v15  ;;  %v1592_v36 = vpack.c.bf16 %v1326_v0, %v1326_v0 }
 0x8f9   :  { %v2909_v34 = vpop.f32.mrf.mxu0  ;;  %2942 = vmatprep.subr.bf16.mxu0 %v3323_v15 }
 0x8fa   :  { %1492 = vrot.lane.b32.xlu1 %v1392_v30, %s3330_s27  ;;  %1694 = vrot.lane.b32.xlu0 %v3734_v33, %s3330_s27 }
 0x8fe   :  { %1744 = vrot.lane.b32.xlu0 %v3734_v33, %s3331_s28  ;;  %1644 = vrot.lane.b32.xlu1 %v3734_v33, %s3327_s25 }
 0x902   :  { %1742 = vrot.lane.b32.xlu0 %v1592_v36, %s3331_s28  ;;  %1641 = vrot.lane.b32.xlu1 %v1592_v36, %s3327_s25 }
 0x906   :  { %1692 = vrot.lane.b32.xlu1 %v1592_v36, %s3330_s27 }
 0x90a   :  { %1889 = vrot.lane.b32.xlu1 %v3717_v19, %s3326_s22 }
 0x968   :  { %v1442_v37 = vpop.permute.xlu1 %1441  ;;  %v1543_v40 = vpop.permute.xlu0 %1542 }
 0x969   :  { %2927 = vmatmul.mubr.msk.bf16.vlgmr.msra.gmra.mxu1 %vm204_vm2, %v1442_v37 }
 0x96a   :  { %2937 = vmatpush3.bf16.xpose.msra.mxu1 %v1550_v38  ;;  %2938 = vmatprep.mubr.msk.bf16.mxu1 %vm3324_vm1, %v3323_v15 }
 0x96b   :  { %2948 = vmatprep.subr.bf16.mxu1 %v3323_v15 }
 0x96c   :  { %v1493_v41 = vpop.permute.xlu1 %1492  ;;  %v1695_v43 = vpop.permute.xlu0 %1694 }
 0x96d   :  { %2933 = vmatmul.mubr.msk.bf16.vlgmr.msra.gmra.mxu0 %vm204_vm2, %v1493_v41  ;;  %v1700_v46 = vsel %vm204_vm2, %v1695_v43, 0 }
 0x96e   :  { %2943 = vmatpush3.bf16.xpose.msra.mxu0 %v1598_v42  ;;  %2944 = vmatprep.mubr.msk.bf16.mxu0 %vm3324_vm1, %v3323_v15 }
 0x96f   :  { %2954 = vmatprep.subr.bf16.mxu0 %v3323_v15 }
 0x970   :  { %v1645_v44 = vpop.permute.xlu1 %1644  ;;  %v1745_v47 = vpop.permute.xlu0 %1744 }
 0x971   :  { %v1650_v39 = vsel %vm204_vm2, %v1645_v44, 0  ;;  %2939 = vmatmul.mubr.msk.bf16.vlgmr.msra.gmra.mxu1 %vm204_vm2, %v1543_v40  ;;  %v1750_v49 = vsel %vm204_vm2, %v1745_v47, 0 }
 0x972   :  { %2949 = vmatpush3.bf16.xpose.msra.mxu1 %v1650_v39  ;;  %2950 = vmatprep.mubr.msk.bf16.mxu1 %vm3324_vm1, %v3323_v15 }
 0x973   :  { %2960 = vmatprep.subr.bf16.mxu1 %v3323_v15 }
 0x974   :  { %v1642_v45 = vpop.permute.xlu1 %1641  ;;  %v1743_v52 = vpop.permute.xlu0 %1742 }
 0x975   :  { %2945 = vmatmul.mubr.msk.bf16.vlgmr.msra.gmra.mxu0 %vm204_vm2, %v1592_v36 }
 0x976   :  { %2955 = vmatpush3.bf16.xpose.msra.mxu0 %v1700_v46  ;;  %2956 = vmatprep.mubr.msk.bf16.mxu0 %vm3324_vm1, %v3323_v15 }
 0x977   :  { %2966 = vmatprep.subr.bf16.mxu0 %v3323_v15 }
 0x978   :  { %v1693_v48 = vpop.permute.xlu1 %1692 }
 0x979   :  { %2951 = vmatmul.mubr.msk.bf16.vlgmr.msra.gmra.mxu1 %vm204_vm2, %v1642_v45 }
 0x97a   :  { %2961 = vmatpush3.bf16.xpose.msra.mxu1 %v1750_v49  ;;  %2962 = vmatprep.mubr.msk.bf16.mxu1 %vm3324_vm1, %v3323_v15 }
 0x97b   :  { %2972 = vmatprep.subr.bf16.mxu1 %v3323_v15 }
 0x97c   :  { %v1890_v50 = vpop.permute.xlu1 %1889 }
 0x97d   :  { %v1895_v51 = vsel %vm703_vm3, %v1890_v50, 0  ;;  %2957 = vmatmul.mubr.msk.bf16.vlgmr.msra.gmra.mxu0 %vm204_vm2, %v1693_v48 }
 0x97e   :  { %2967 = vmatpush3.bf16.msra.mxu0 %v1895_v51  ;;  %2968 = vmatprep.mubr.msk.bf16.mxu0 %vm3324_vm1, %v3323_v15 }
 0x97f   :  { %2978 = vmatprep.subr.bf16.mxu0 %v3323_v15 }
 0x981   :  { %2963 = vmatmul.mubr.msk.bf16.vlgmr.msra.gmra.mxu1 %vm204_vm2, %v1743_v52 }
 0x982   :  { %2974 = vmatprep.mubr.msk.bf16.mxu1 %vm3324_vm1, %v3323_v15 }
 0x9b7   :  { %v1434_v53 = vpop.f32.mrf.mxu0 }
 0x9b8   :  { %v1792_v54 = vmul.f32 0.35355338, %v1434_v53 }
 0x9b9   :  { %v2922_v55 = vpop.f32.mrf.mxu0 }
 0x9ba   :  { %v1800_v56 = vsel %vm204_vm2, %v1792_v54, -inf }
 0x9bb   :  { %v1437_v57 = vpop.f32.mrf.mxu0  ;;  %1801 = vmax.xlane.f32.xlu1 %v1800_v56 }
 0x9bd   :  { %v2923_v58 = vpop.f32.mrf.mxu0 }
 0xa29   :  { %v1486_v59 = vpop.f32.mrf.mxu1 }
 0xa2a   :  { %v1793_v60 = vmul.f32 0.35355338, %v1486_v59 }
 0xa2b   :  { %v2928_v61 = vpop.f32.mrf.mxu1 }
 0xa2c   :  { %v1803_v62 = vsel %vm204_vm2, %v1793_v60, -inf }
 0xa2d   :  { %v1536_v2 = vpop.f32.mrf.mxu0  ;;  %1804 = vmax.xlane.f32.xlu0 %v1803_v62  ;;  %v1489_v3 = vpop.f32.mrf.mxu1 }
 0xa2e   :  { %v1794_v35 = vmul.f32 0.35355338, %v1536_v2 }
 0xa2f   :  { %v2929_v4 = vpop.f32.mrf.mxu1  ;;  %v2934_v63 = vpop.f32.mrf.mxu0 }
 0xa30   :  { %v1806_v5 = vsel %vm204_vm2, %v1794_v35, -inf }
 0xa31   :  { %v1539_v6 = vpop.f32.mrf.mxu0  ;;  %1807 = vmax.xlane.f32.xlu0 %v1806_v5  ;;  %v1586_v7 = vpop.f32.mrf.mxu1 }
 0xa32   :  { %v1795_v8 = vmul.f32 0.35355338, %v1586_v7 }
 0xa33   :  { %v2935_v9 = vpop.f32.mrf.mxu0  ;;  %v2940_v10 = vpop.f32.mrf.mxu1 }
 0xa34   :  { %v1809_v11 = vsel %vm204_vm2, %v1795_v8, -inf }
 0xa35   :  { %v1634_v12 = vpop.f32.mrf.mxu0  ;;  %1810 = vmax.xlane.f32.xlu0 %v1809_v11  ;;  %v1589_v13 = vpop.f32.mrf.mxu1 }
 0xa36   :  { %v1796_v14 = vmul.f32 0.35355338, %v1634_v12 }
 0xa37   :  { %v2941_v16 = vpop.f32.mrf.mxu1  ;;  %v2946_v17 = vpop.f32.mrf.mxu0 }
 0xa38   :  { %v1812_v18 = vsel %vm204_vm2, %v1796_v14, -inf }
 0xa39   :  { %1813 = vmax.xlane.f32.xlu1 %v1812_v18  ;;  %v1637_v20 = vpop.f32.mrf.mxu0  ;;  %v1686_v21 = vpop.f32.mrf.mxu1 }
 0xa3a   :  { %v3790_v22 = vmul.f32 0.35355338, %v1686_v21 }
 0xa3b   :  { %v2947_v24 = vpop.f32.mrf.mxu0  ;;  %v2952_v25 = vpop.f32.mrf.mxu1 }
 0xa3c   :  { %v1815_v26 = vsel %vm204_vm2, %v3790_v22, -inf }
 0xa3d   :  { %v1736_v27 = vpop.f32.mrf.mxu0  ;;  %1816 = vmax.xlane.f32.xlu0 %v1815_v26  ;;  %v1689_v28 = vpop.f32.mrf.mxu1 }
 0xa3e   :  { %v1798_v30 = vmul.f32 0.35355338, %v1736_v27 }
 0xa3f   :  { %v2953_v31 = vpop.f32.mrf.mxu1  ;;  %v2958_v32 = vpop.f32.mrf.mxu0 }
 0xa40   :  { %v1818_v0 = vsel %vm204_vm2, %v1798_v30, -inf }
 0xa41   :  { %1819 = vmax.xlane.f32.xlu1 %v1818_v0  ;;  %v1739_v34 = vpop.f32.mrf.mxu0  ;;  %v1786_v36 = vpop.f32.mrf.mxu1 }
 0xa42   :  { %v3795_v1 = vmul.f32 0.35355338, %v1786_v36 }
 0xa43   :  { %v2959_v37 = vpop.f32.mrf.mxu0  ;;  %v2964_v38 = vpop.f32.mrf.mxu1 }
 0xa44   :  { %v1821_v40 = vsel %vm204_vm2, %v3795_v1, -inf  ;;  %v1802_v43 = vpop.xlane.xlu1 %1801 }
 0xa45   :  { %1822 = vmax.xlane.f32.xlu0 %v1821_v40  ;;  %v1789_v41 = vpop.f32.mrf.mxu1  ;;  %v1824_v44 = vsub.f32 %v1792_v54, %v1802_v43 }
 0xa47   :  { %v2965_v42 = vpop.f32.mrf.mxu1  ;;  %v1832_v39 = vmul.f32 1.442695, %v1824_v44 }
 0xa49   :  { %3167 = vpow2.f32 %v1832_v39 }
 0xa52   :  { %1987 = vrot.lane.b32.xlu1 %v3717_v19, %s3329_s6 }
 0xa56   :  { %2036 = vrot.lane.b32.xlu1 %v3717_v19, %s3328_s26  ;;  %v3805_v45 = vpop.eup %3167 }
 0xa57   :  { %v1848_v46 = vsel %vm204_vm2, %v3805_v45, 0.0 }
 0xa5b   :  { %1938 = vrot.lane.b32.xlu0 %v3717_v19, %s3325_s21 }
 0xa7a   :  { %1849 = vadd.xlane.f32.xlu1 %v1848_v46 }
 0xa8b   :  { %2100 = vrot.lane.b32.xlu1 %v3734_v33, %s3326_s22 }
 0xab6   :  { %v1805_v47 = vpop.xlane.xlu0 %1804 }
 0xab7   :  { %v1825_v48 = vsub.f32 %v1793_v60, %v1805_v47 }
 0xab9   :  { %v1834_v49 = vmul.f32 1.442695, %v1825_v48 }
 0xaba   :  { %v1808_v50 = vpop.xlane.xlu0 %1807 }
 0xabb   :  { %3169 = vpow2.f32 %v1834_v49  ;;  %v1826_v51 = vsub.f32 %v1794_v35, %v1808_v50 }
 0xabd   :  { %v1836_v19 = vmul.f32 1.442695, %v1826_v51 }
 0xabe   :  { %v1811_v52 = vpop.xlane.xlu0 %1810 }
 0xabf   :  { %3171 = vpow2.f32 %v1836_v19  ;;  %v1827_v53 = vsub.f32 %v1795_v8, %v1811_v52 }
 0xac1   :  { %v1838_v54 = vmul.f32 1.442695, %v1827_v53 }
 0xac2   :  { %v1814_v55 = vpop.xlane.xlu1 %1813 }
 0xac3   :  { %3173 = vpow2.f32 %v1838_v54  ;;  %v1828_v56 = vsub.f32 %v1796_v14, %v1814_v55 }
 0xac5   :  { %v1840_v57 = vmul.f32 1.442695, %v1828_v56 }
 0xac6   :  { %v1817_v61 = vpop.xlane.xlu0 %1816 }
 0xac7   :  { %3175 = vpow2.f32 %v1840_v57  ;;  %v1829_v12 = vsub.f32 %v3790_v22, %v1817_v61 }
 0xac8   :  { %v3170_v58 = vpop.eup %3169 }
 0xac9   :  { %v1851_v59 = vsel %vm204_vm2, %v3170_v58, 0.0  ;;  %v1842_v13 = vmul.f32 1.442695, %v1829_v12 }
 0xaca   :  { %v1820_v62 = vpop.xlane.xlu1 %1819  ;;  %1852 = vadd.xlane.f32.xlu0 %v1851_v59 }
 0xacb   :  { %v1830_v60 = vsub.f32 %v1798_v30, %v1820_v62 }
 0xacc   :  { %v3172_v2 = vpop.eup %3171 }
 0xacd   :  { %v1844_v3 = vmul.f32 1.442695, %v1830_v60  ;;  %v1854_v35 = vsel %vm204_vm2, %v3172_v2, 0.0 }
 0xace   :  { %1855 = vadd.xlane.f32.xlu1 %v1854_v35  ;;  %v1823_v4 = vpop.xlane.xlu0 %1822  ;;  %v1988_v17 = vpop.permute.xlu1 %1987 }
 0xacf   :  { %3177 = vpow2.f32 %v1844_v3  ;;  %v1831_v14 = vsub.f32 %v3795_v1, %v1823_v4  ;;  %v1993_v30 = vsel %vm703_vm3, %v1988_v17, 0 }
 0xad0   :  { %v3813_v63 = vpop.eup %3173  ;;  %3179 = vpow2.f32 %v1842_v13 }
 0xad1   :  { %v1857_v5 = vsel %vm204_vm2, %v3813_v63, 0.0  ;;  %v1846_v16 = vmul.f32 1.442695, %v1831_v14 }
 0xad2   :  { %1858 = vadd.xlane.f32.xlu0 %v1857_v5  ;;  %v1939_v6 = vpop.permute.xlu0 %1938  ;;  %v2037_v18 = vpop.permute.xlu1 %2036 }
 0xad3   :  { %v1944_v7 = vsel %vm703_vm3, %v1939_v6, 0  ;;  %3181 = vpow2.f32 %v1846_v16  ;;  %v2042_v41 = vsel %vm703_vm3, %v2037_v18, 0 }
 0xad4   :  { %v3818_v8 = vpop.eup %3175  ;;  %2973 = vmatpush3.bf16.msra.mxu1 %v1944_v7 }
 0xad5   :  { %v1860_v9 = vsel %vm204_vm2, %v3818_v8, 0.0  ;;  %2984 = vmatprep.subr.bf16.mxu1 %v3323_v15 }
 0xad6   :  { %1861 = vadd.xlane.f32.xlu1 %v1860_v9 }
 0xadc   :  { %v3823_v10 = vpop.eup %3177 }
 0xadd   :  { %v1866_v11 = vsel %vm204_vm2, %v3823_v10, 0.0  ;;  %v3833_v20 = vpop.eup %3179 }
 0xade   :  { %1867 = vadd.xlane.f32.xlu1 %v1866_v11  ;;  %v1863_v24 = vsel %vm204_vm2, %v3833_v20, 0.0 }
 0xae0   :  { %v3837_v25 = vpop.eup %3181 }
 0xae1   :  { %v1869_v22 = vsel %vm204_vm2, %v3837_v25, 0.0 }
 0xae8   :  { %2149 = vrot.lane.b32.xlu0 %v3734_v33, %s3325_s21  ;;  %s2615_s21 = sshll.u32 %s3337_s4, 4  ;;  %s2616_s21 = int_to_ptr.vmem [resolvable:$true] %s2615_s21 }
 0xae9   :  { %s3287_s22 = scalar_lea.vmem %s2616_s21, 256  ;;  %p3292_p7 = scmp.lt.s32.totalorder %s2616_s21, %s2616_s21 }
 0xaea   :  { %p3288_p6 = scmp.ne.s32.totalorder %s2616_s21, %s3287_s22  ;;  %p3293_p8 = scmp.lt.s32.totalorder %s3287_s22, %s3287_s22 }
 0xaec   :  { %p3294_p9 = por %p3293_p8, %p3292_p7 }
 0xaee   :  { %p3295_p10 = pnand %p3294_p9, %p3288_p6 }
 0xaef   :  { %2198 = vrot.lane.b32.xlu1 %v3734_v33, %s3329_s6 }
 0xb03   :  { %v1850_v21 = vpop.xlane.xlu1 %1849 }
 0xb04   :  { %3183 = vrcp.f32 %v1850_v21 }
 0xb07   :  { %1864 = vadd.xlane.f32.xlu0 %v1863_v24  ;;  %v2101_v31 = vpop.permute.xlu1 %2100 }
 0xb08   :  { %v2106_v39 = vsel %vm703_vm3, %v2101_v31, 0 }
 0xb0b   :  { %1870 = vadd.xlane.f32.xlu0 %v1869_v22 }
 0xb11   :  { %v3184_v26 = vpop.eup %3183 }
 0xb12   :  { %v1880_v27 = vmul.f32 %v3184_v26, %v3805_v45 }
 0xb14   :  { %v1888_v28 = vpack.c.bf16 %v1880_v27, %v1880_v27 }
 0xb16   :  { %2969 = vmatmul.mubr.msk.bf16.vlgmr.msra.gmra.mxu0 %vm204_vm2, %v1888_v28 }
 0xb17   :  { %2979 = vmatpush3.bf16.msra.mxu0 %v1993_v30  ;;  %2980 = vmatprep.mubr.msk.bf16.mxu0 %vm3324_vm1, %v3323_v15 }
 0xb18   :  { %2990 = vmatprep.subr.bf16.mxu0 %v3323_v15 }
 0xb21   :  { %2247 = vrot.lane.b32.xlu0 %v3734_v33, %s3328_s26 }
 0xb53   :  { %v1853_v32 = vpop.xlane.xlu0 %1852 }
 0xb54   :  { %3185 = vrcp.f32 %v1853_v32  ;;  %v3111_v32 = vld [vmem:[#allocation7 + $0x8] sm:$0xff]  }
 0xb57   :  { %v1856_v0 = vpop.xlane.xlu1 %1855 }
 0xb58   :  { %3187 = vrcp.f32 %v1856_v0 }
 0xb5b   :  { %v1859_v34 = vpop.xlane.xlu0 %1858 }
 0xb5c   :  { %3189 = vrcp.f32 %v1859_v34  ;;  %v3112_v34 = vld [vmem:[#allocation7] sm:$0xff]  }
 0xb5f   :  { %v1862_v36 = vpop.xlane.xlu1 %1861  ;;  %v2150_v46 = vpop.permute.xlu0 %2149 }
 0xb60   :  { %3191 = vrcp.f32 %v1862_v36  ;;  %v2155_v49 = vsel %vm703_vm3, %v2150_v46, 0 }
 0xb61   :  { %v3186_v1 = vpop.eup %3185 }
 0xb62   :  { %v1881_v37 = vmul.f32 %v3186_v1, %v3170_v58 }
 0xb64   :  { %v1937_v38 = vpack.c.bf16 %v1881_v37, %v1881_v37 }
 0xb65   :  { %v3188_v40 = vpop.eup %3187 }
 0xb66   :  { %2975 = vmatmul.mubr.msk.bf16.vlgmr.msra.gmra.mxu1 %vm204_vm2, %v1937_v38  ;;  %v1882_v42 = vmul.f32 %v3188_v40, %v3172_v2 }
 0xb67   :  { %2985 = vmatpush3.bf16.msra.mxu1 %v2042_v41  ;;  %v1868_v33 = vpop.xlane.xlu1 %1867  ;;  %2986 = vmatprep.mubr.msk.bf16.mxu1 %vm3324_vm1, %v3323_v15 }
 0xb68   :  { %3193 = vrcp.f32 %v1868_v33  ;;  %v1986_v43 = vpack.c.bf16 %v1882_v42, %v1882_v42  ;;  %2996 = vmatprep.subr.bf16.mxu1 %v3323_v15 }
 0xb69   :  { %v3190_v44 = vpop.eup %3189 }
 0xb6a   :  { %2981 = vmatmul.mubr.msk.bf16.vlgmr.msra.gmra.mxu0 %vm204_vm2, %v1986_v43  ;;  %v1883_v45 = vmul.f32 %v3190_v44, %v3813_v63 }
 0xb6b   :  { %2991 = vmatpush3.bf16.msra.mxu0 %v2106_v39  ;;  %2992 = vmatprep.mubr.msk.bf16.mxu0 %vm3324_vm1, %v3323_v15  ;;  %v2199_v51 = vpop.permute.xlu1 %2198 }
 0xb6c   :  { %v2035_v47 = vpack.c.bf16 %v1883_v45, %v1883_v45  ;;  %3002 = vmatprep.subr.bf16.mxu0 %v3323_v15  ;;  %v2204_v52 = vsel %vm703_vm3, %v2199_v51, 0 }
 0xb6d   :  { %v3192_v48 = vpop.eup %3191 }
 0xb6e   :  { %2987 = vmatmul.mubr.msk.bf16.vlgmr.msra.gmra.mxu1 %vm204_vm2, %v2035_v47  ;;  %v1884_v50 = vmul.f32 %v3192_v48, %v3818_v8 }
 0xb6f   :  { %2997 = vmatpush3.bf16.msra.mxu1 %v2155_v49  ;;  %2998 = vmatprep.mubr.msk.bf16.mxu1 %vm3324_vm1, %v3323_v15 }
 0xb70   :  { %v2099_v19 = vpack.c.bf16 %v1884_v50, %v1884_v50  ;;  %3008 = vmatprep.subr.bf16.mxu1 %v3323_v15 }
 0xb72   :  { %2993 = vmatmul.mubr.msk.bf16.vlgmr.msra.gmra.mxu0 %vm204_vm2, %v2099_v19 }
 0xb73   :  { %3003 = vmatpush3.bf16.msra.mxu0 %v2204_v52  ;;  %3004 = vmatprep.mubr.msk.bf16.mxu0 %vm3324_vm1, %v3323_v15 }
 0xb74   :  { %3014 = vmatprep.subr.bf16.mxu0 %v3323_v15 }
 0xb75   :  { %v3194_v53 = vpop.eup %3193 }
 0xb76   :  { %v1886_v54 = vmul.f32 %v3194_v53, %v3823_v10 }
 0xb78   :  { %v2197_v55 = vpack.c.bf16 %v1886_v54, %v1886_v54 }
 0xb7a   :  { %3005 = vmatmul.mubr.msk.bf16.vlgmr.msra.gmra.mxu0 %vm204_vm2, %v2197_v55 }
 0xb7b   :  { %3018 = vmatprep.mubr.msk.bf16.mxu0 %vm3324_vm1, %v3323_v15  ;;  %3015 = vmatpush3.bf16.msra.mxu0 %v3111_v32 }
 0xb7c   :  { %3016 = vmatprep.subr.bf16.mxu0 %v3323_v15 }
 0xb7f   :  { %3017 = vmatpush3.bf16.msra.mxu0 %v3112_v34 }
 0xb80   :  { %3030 = vmatprep.subr.bf16.mxu0 %v3323_v15 }
 0xb90   :  { %v1865_v56 = vpop.xlane.xlu0 %1864 }
 0xb91   :  { %3195 = vrcp.f32 %v1865_v56 }
 0xb94   :  { %v1871_v57 = vpop.xlane.xlu0 %1870 }
 0xb95   :  { %3197 = vrcp.f32 %v1871_v57 }
 0xb98   :  { %v2248_v61 = vpop.permute.xlu0 %2247 }
 0xb99   :  { %v2253_v2 = vsel %vm703_vm3, %v2248_v61, 0 }
 0xb9e   :  { %v3196_v58 = vpop.eup %3195 }
 0xb9f   :  { %v1885_v59 = vmul.f32 %v3196_v58, %v3833_v20  ;;  %v2680_v58 = vld [vmem:[%s3973_s2 + $0x9] ss:$0 sm:$0xff] }
 0xba1   :  { %v2148_v62 = vpack.c.bf16 %v1885_v59, %v1885_v59 }
 0xba2   :  { %v3198_v60 = vpop.eup %3197 }
 0xba3   :  { %2999 = vmatmul.mubr.msk.bf16.vlgmr.msra.gmra.mxu1 %vm204_vm2, %v2148_v62  ;;  %v1887_v3 = vmul.f32 %v3198_v60, %v3837_v25 }
 0xba4   :  { %3009 = vmatpush3.bf16.msra.mxu1 %v2253_v2  ;;  %3010 = vmatprep.mubr.msk.bf16.mxu1 %vm3324_vm1, %v3323_v15 }
 0xba5   :  { %3022 = vmatprep.subr.bf16.mxu1 %v3323_v15  ;;  %v2246_v35 = vpack.c.bf16 %v1887_v3, %v1887_v3 }
 0xbab   :  { %3011 = vmatmul.mubr.msk.bf16.vlgmr.msra.gmra.mxu1 %vm204_vm2, %v2246_v35 }
 0xbac   :  { %3026 = vmatprep.mubr.msk.bf16.mxu1 %vm3324_vm1, %v3323_v15 }
 0xbd6   :  { %v1931_v4 = vpop.f32.mrf.mxu0 }
 0xbd8   :  { %v2970_v63 = vpop.f32.mrf.mxu0 }
 0xbda   :  { %v1934_v5 = vpop.f32.mrf.mxu0 }
 0xbdc   :  { %v2971_v6 = vpop.f32.mrf.mxu0 }
 0xc26   :  { %v1980_v7 = vpop.f32.mrf.mxu1 }
 0xc28   :  { %v2976_v8 = vpop.f32.mrf.mxu1 }
 0xc2a   :  { %v1983_v9 = vpop.f32.mrf.mxu1  ;;  %v2029_v10 = vpop.f32.mrf.mxu0 }
 0xc2c   :  { %v2977_v11 = vpop.f32.mrf.mxu1  ;;  %v2982_v12 = vpop.f32.mrf.mxu0 }
 0xc2e   :  { %v2032_v13 = vpop.f32.mrf.mxu0  ;;  %v2078_v14 = vpop.f32.mrf.mxu1 }
 0xc30   :  { %v2983_v16 = vpop.f32.mrf.mxu0  ;;  %v2988_v17 = vpop.f32.mrf.mxu1 }
 0xc31   :  { %v3114_v16 = vld [vmem:[#allocation8] sm:$0xff]   ;;  %v3115_v17 = vld [vmem:[%s3980_s9 + $0x38] sm:$0xff]  }
 0xc32   :  { %v2081_v18 = vpop.f32.mrf.mxu1  ;;  %v2142_v20 = vpop.f32.mrf.mxu0 }
 0xc34   :  { %v2989_v21 = vpop.f32.mrf.mxu1  ;;  %v2994_v24 = vpop.f32.mrf.mxu0 }
 0xc36   :  { %v2145_v25 = vpop.f32.mrf.mxu0 }
 0xc38   :  { %v2995_v22 = vpop.f32.mrf.mxu0 }
 0xc3a   :  { %v2240_v26 = vpop.f32.mrf.mxu0 }
 0xc3b   :  { %v3093_v27 = vpack.i.bf16 %v2240_v26, %v2029_v10 }
 0xc3c   :  { %v3006_v28 = vpop.f32.mrf.mxu0 }
 0xc3d   :  { %3094 = vrot.lane.b32.xlu0 %v3093_v27, %s3336_s7  ;;  %v2684_v28 = vld [vmem:[%s3973_s2 + $0x6] ss:$0 sm:$0xff] }
 0xc3e   :  { %v2243_v30 = vpop.f32.mrf.mxu0 }
 0xc40   :  { %v3007_v31 = vpop.f32.mrf.mxu0 }
 0xc63   :  { %v2191_v0 = vpop.f32.mrf.mxu1 }
 0xc64   :  { %v3088_v36 = vpack.i.bf16 %v2191_v0, %v1980_v7  ;;  %v2685_v0 = vld [vmem:[%s3973_s2 + $0x7] ss:$0 sm:$0xff] }
 0xc65   :  { %v3000_v1 = vpop.f32.mrf.mxu1 }
 0xc66   :  { %3089 = vrot.lane.b32.xlu1 %v3088_v36, %s3320_s24 }
 0xc67   :  { %v2194_v37 = vpop.f32.mrf.mxu1 }
 0xc69   :  { %v3001_v38 = vpop.f32.mrf.mxu1 }
 0xc6a   :  { %v3116_v38 = vld [vmem:[%s3980_s9 + $0x30] sm:$0xff]  }
 0xc6b   :  { %v2289_v40 = vpop.f32.mrf.mxu1 }
 0xc6c   :  { %v3098_v41 = vpack.i.bf16 %v2289_v40, %v2078_v14  ;;  %v3113_v14 = vld [vmem:[#allocation8 + $0x8] sm:$0xff]   ;;  %v3117_v40 = vld [vmem:[%s3980_s9 + $0x28] sm:$0xff]  }
 0xc6d   :  { %v3012_v42 = vpop.f32.mrf.mxu1  ;;  %3023 = vmatpush3.bf16.msra.mxu1 %v3113_v14 }
 0xc6e   :  { %3099 = vrot.lane.b32.xlu1 %v3098_v41, %s3335_s14  ;;  %3024 = vmatprep.subr.bf16.mxu1 %v3323_v15  ;;  %v3118_v41 = vld [vmem:[%s3980_s9 + $0x20] sm:$0xff]   ;;  %v3119_v42 = vld [vmem:[%s3980_s9 + $0x18] sm:$0xff]  }
 0xc6f   :  { %v2292_v33 = vpop.f32.mrf.mxu1 }
 0xc70   :  { %v3120_v33 = vld [vmem:[%s3980_s9 + $0x10] sm:$0xff]  }
 0xc71   :  { %v3013_v43 = vpop.f32.mrf.mxu1  ;;  %3025 = vmatpush3.bf16.msra.mxu1 %v3114_v16 }
 0xc72   :  { %v3121_v43 = vld [vmem:[%s3980_s9 + $0x8] sm:$0xff]  }
 0xcaf   :  { %v3095_v46 = vpop.permute.xlu0 %3094 }
 0xcb0   :  { %v3097_v49 = vunpack.i.h.bf16 %v3095_v46  ;;  %v3096_v50 = vunpack.i.l.bf16 %v3095_v46 }
 0xcd8   :  { %v3090_v44 = vpop.permute.xlu1 %3089 }
 0xcd9   :  { %v3092_v39 = vunpack.i.h.bf16 %v3090_v44  ;;  %v3091_v45 = vunpack.i.l.bf16 %v3090_v44  ;;  %v3122_v44 = vld [vmem:[%s3980_s9] sm:$0xff]  }
 0xcdb   :  { %v2307_v47 = vsel %vm204_vm2, %v2142_v20, %v3092_v39  ;;  %v2096_v48 = vsel %vm204_vm2, %v1931_v4, %v3091_v45  ;;  %v2686_v39 = vld [vmem:[%s3973_s2 + $0xb] ss:$0 sm:$0xff] }
 0xcdc   :  { %v2097_v53 = vsel %vm907_vm4, %v2096_v48, %v3096_v50  ;;  %v2308_v54 = vsel %vm907_vm4, %v2307_v47, %v3097_v49 }
 0xce0   :  { %v3100_v51 = vpop.permute.xlu1 %3099 }
 0xce1   :  { %v3102_v19 = vunpack.i.h.bf16 %v3100_v51  ;;  %v3101_v52 = vunpack.i.l.bf16 %v3100_v51 }
 0xce3   :  { %v2309_v55 = vsel %vm909_vm5, %v2308_v54, %v3102_v19  ;;  %v2098_v56 = vsel %vm909_vm5, %v2097_v53, %v3101_v52 }
 0xce4   :  { %v2310_v57 = vpack.c.bf16 %v2309_v55, %v2098_v56 }
 0xce6   :  { %3019 = vmatmul.mubr.msk.bf16.vlgmr.msra.gmra.mxu0 %vm98_vm0, %v2310_v57 }
 0xce7   :  { %3046 = vmatprep.mubr.msk.bf16.mxu0 %vm3324_vm1, %v3323_v15  ;;  %3031 = vmatpush3.bf16.msra.mxu0 %v3115_v17 }
 0xce8   :  { %3032 = vmatprep.subr.bf16.mxu0 %v3323_v15 }
 0xceb   :  { %3033 = vmatpush3.bf16.msra.mxu0 %v3116_v38 }
 0xcec   :  { %3034 = vmatprep.subr.bf16.mxu0 %v3323_v15 }
 0xcef   :  { %3035 = vmatpush3.bf16.msra.mxu0 %v3117_v40 }
 0xcf0   :  { %3036 = vmatprep.subr.bf16.mxu0 %v3323_v15 }
 0xcf3   :  { %3037 = vmatpush3.bf16.msra.mxu0 %v3118_v41 }
 0xcf4   :  { %3038 = vmatprep.subr.bf16.mxu0 %v3323_v15 }
 0xcf7   :  { %3039 = vmatpush3.bf16.msra.mxu0 %v3119_v42 }
 0xcf8   :  { %3040 = vmatprep.subr.bf16.mxu0 %v3323_v15 }
 0xcfb   :  { %3041 = vmatpush3.bf16.msra.mxu0 %v3120_v33 }
 0xcfc   :  { %3042 = vmatprep.subr.bf16.mxu0 %v3323_v15 }
 0xcff   :  { %3043 = vmatpush3.bf16.msra.mxu0 %v3121_v43 }
 0xd00   :  { %3044 = vmatprep.subr.bf16.mxu0 %v3323_v15 }
 0xd03   :  { %3045 = vmatpush3.bf16.msra.mxu0 %v3122_v44 }
 0xda6   :  { %v2368_v59 = vpop.f32.mrf.mxu0 }
 0xda7   :  { %v2369_v61 = vadd.f32 %v2680_v58, %v2368_v59 }
 0xda8   :  { %v3020_v62 = vpop.f32.mrf.mxu0 }
 0xda9   :  { %v3903_v60 = vadd.f32 %v2369_v61, %v3675_v23  ;;  %v2698_v62 = vld [vmem:[%s3973_s2 + $0xa] ss:$0 sm:$0xff] }
 0xdaa   :  { %v2371_v2 = vpop.f32.mrf.mxu0 }
 0xdab   :  { %v2372_v3 = vadd.f32 %v2680_v58, %v2371_v2  ;;  %v2379_v35 = vsel %vm98_vm0, %v3903_v60, 0.0 }
 0xdac   :  { %2380 = vadd.xlane.f32.xlu0 %v2379_v35  ;;  %v3021_v4 = vpop.f32.mrf.mxu0 }
 0xdad   :  { %v3908_v63 = vadd.f32 %v2372_v3, %v3680_v29 }
 0xdaf   :  { %v2382_v5 = vsel %vm98_vm0, %v3908_v63, 0.0 }
 0xdb0   :  { %2383 = vadd.xlane.f32.xlu1 %v2382_v5 }
 0xe35   :  { %v2381_v6 = vpop.xlane.xlu0 %2380 }
 0xe36   :  { %v2385_v7 = vmul.f32 0.03125, %v2381_v6 }
 0xe38   :  { %v2387_v8 = vsub.f32 %v3903_v60, %v2385_v7 }
 0xe39   :  { %v2384_v23 = vpop.xlane.xlu1 %2383 }
 0xe3a   :  { %v2386_v9 = vmul.f32 0.03125, %v2384_v23  ;;  %v2389_v10 = vmul.f32 %v2387_v8, %v2387_v8 }
 0xe3c   :  { %v2388_v11 = vsub.f32 %v3908_v63, %v2386_v9  ;;  %v2391_v12 = vsel %vm98_vm0, %v2389_v10, 0.0 }
 0xe3d   :  { %2392 = vadd.xlane.f32.xlu0 %v2391_v12 }
 0xe3e   :  { %v2390_v13 = vmul.f32 %v2388_v11, %v2388_v11 }
 0xe40   :  { %v2394_v29 = vsel %vm98_vm0, %v2390_v13, 0.0 }
 0xe41   :  { %2395 = vadd.xlane.f32.xlu0 %v2394_v29 }
 0xec6   :  { %v2393_v18 = vpop.xlane.xlu0 %2392 }
 0xec7   :  { %v2397_v20 = vmul.f32 0.03125, %v2393_v18 }
 0xec9   :  { %v2399_v21 = vadd.f32 1e-05, %v2397_v20 }
 0xeca   :  { %v2396_v24 = vpop.xlane.xlu0 %2395 }
 0xecb   :  { %3199 = vrsqrt.f32 %v2399_v21  ;;  %v2398_v25 = vmul.f32 0.03125, %v2396_v24 }
 0xecd   :  { %v2400_v22 = vadd.f32 1e-05, %v2398_v25 }
 0xecf   :  { %3201 = vrsqrt.f32 %v2400_v22 }
 0xed8   :  { %v3200_v26 = vpop.eup %3199 }
 0xed9   :  { %v2403_v27 = vmul.f32 %v3200_v26, %v2387_v8 }
 0xedb   :  { %v2409_v32 = vmul.f32 %v2684_v28, %v2403_v27 }
 0xedc   :  { %v3202_v30 = vpop.eup %3201 }
 0xedd   :  { %v2404_v31 = vmul.f32 %v3202_v30, %v2388_v11  ;;  %v2415_v36 = vadd.f32 %v2685_v0, %v2409_v32 }
 0xedf   :  { %v2410_v34 = vmul.f32 %v2684_v28, %v2404_v31 }
 0xee1   :  { %v2416_v1 = vadd.f32 %v2685_v0, %v2410_v34 }
 0xee3   :  { %v2417_v37 = vpack.c.bf16 %v2416_v1, %v2415_v36 }
 0xee5   :  { %3027 = vmatmul.mubr.msk.bf16.vlgmr.msra.gmra.mxu1 %vm98_vm0, %v2417_v37 }
 0xfa5   :  { %v2476_v45 = vpop.f32.mrf.mxu1 }
 0xfa6   :  { %v2477_v46 = vadd.f32 %v2686_v39, %v2476_v45 }
 0xfa7   :  { %v3028_v47 = vpop.f32.mrf.mxu1 }
 0xfa8   :  { %v2485_v48 = vmul.f32 0.70710677, %v2477_v46  ;;  %v2483_v54 = vmul.f32 0.5, %v2477_v46 }
 0xfa9   :  { %v2479_v49 = vpop.f32.mrf.mxu1 }
 0xfaa   :  { %3203 = verf.f32 %v2485_v48  ;;  %v2480_v50 = vadd.f32 %v2686_v39, %v2479_v49 }
 0xfab   :  { %v3029_v51 = vpop.f32.mrf.mxu1 }
 0xfac   :  { %v2486_v19 = vmul.f32 0.70710677, %v2480_v50  ;;  %v2484_v55 = vmul.f32 0.5, %v2480_v50 }
 0xfae   :  { %3205 = verf.f32 %v2486_v19 }
 0xfb7   :  { %v3204_v15 = vpop.eup %3203 }
 0xfb8   :  { %v2489_v52 = vadd.f32 1.0, %v3204_v15 }
 0xfba   :  { %v2491_v57 = vmul.f32 %v2489_v52, %v2483_v54 }
 0xfbb   :  { %v3206_v53 = vpop.eup %3205 }
 0xfbc   :  { %v2490_v56 = vadd.f32 1.0, %v3206_v53 }
 0xfbe   :  { %v2492_v58 = vmul.f32 %v2490_v56, %v2484_v55 }
 0xfc0   :  { %v2493_v59 = vpack.c.bf16 %v2492_v58, %v2491_v57 }
 0xfc2   :  { %3047 = vmatmul.mubr.bf16.vlgmr.msra.gmra.mxu0 %v2493_v59 }
0x1082   :  { %v2592_v61 = vpop.f32.mrf.mxu0 }
0x1083   :  { %v2599_v2 = vadd.f32 %v2592_v61, %v3903_v60 }
0x1084   :  { %v3048_v3 = vpop.f32.mrf.mxu0 }
0x1085   :  { %v2606_v35 = vadd.f32 %v2698_v62, %v2599_v2 }
0x1086   :  { %v2595_v4 = vpop.f32.mrf.mxu0 }
0x1087   :  { %2608 = vst.msk [vmem:[#allocation10] sm:$0xff] %vm98_vm0, %v2606_v35  ;;  %v2600_v5 = vadd.f32 %v2595_v4, %v3908_v63 }
0x1088   :  { %v3049_v6 = vpop.f32.mrf.mxu0 }
0x1089   :  { %v2607_v7 = vadd.f32 %v2698_v62, %v2600_v5 }
0x108b   :  { %2609 = vst.msk [vmem:[#allocation10 + $0x8] sm:$0xff] %vm98_vm0, %v2607_v7 }
0x108c   :  { %3298 = shalt.err (!%p3295_p10)
}
0x108d   :  { %2621 = dma.vmem_to_hbm [thread:$0]  %s2616_s21, 256, %s3981_s10, [#allocation4], %s3319_s23, %s3319_s23, %s3320_s24  }
0x108e   :  { %3313 = dma.done.wait [#allocation4], 256  }
0x108f   :  { %3314 = vsyncadd [#allocation4], 4294967040 }
0x1090   :  { %2625 = vsyncpa [#allocation3], 1 }
0x1091   :  { %2626 = vsyncpa [#allocation6], 1 }
0x1092   :  { %2627 = vsyncpa [#allocation9], 1 }
0x1093   :  { %2628 = vsyncpa [#allocation4], 1 }

</bundles_post_ra>
